<compile_context>
chip_gen: v6e
topology: v6e:2x2x1
jax: 0.10.0
libtpu: 0.0.40
codegen_flags: <defaults>
</compile_context>

<pallas_src>
import jax
import jax.numpy as jnp
import numpy as np
from jax import lax
from jax.experimental import pallas as pl
from jax.experimental.pallas import tpu as pltpu

# Keep XLA-side reference matmuls at full f32 so the 1e-4 comparison is meaningful.
jax.config.update("jax_default_matmul_precision", "highest")


def gru_fused_kernel(tok_ref,      # (S*B, 1)   int32 token ids, time-major rows
                     emb_ref,      # (Vpad, H)  embedding table, zero-padded rows
                     w_i_ref,      # (H, 3H)    fused input-projection weights (r,z,n)
                     w_h_ref,      # (H, 3H)    fused hidden-projection weights (r,z,n)
                     b_gi_ref,     # (1, 3H)    [b_ir+b_hr, b_iz+b_hz, b_in]
                     b_hn_ref,     # (1, H)     b_hn (must stay inside r * (...))
                     w_fc_ref,     # (H, O_pad) fc weights, lane-padded
                     b_fc_ref,     # (1, O_pad) fc bias, lane-padded
                     out_ref,      # (S*B, O_pad)
                     hN_ref):      # (B, H)     final hidden state
    S_B = tok_ref.shape[0]
    V_pad, H = emb_ref.shape
    B = hN_ref.shape[0]
    S = S_B // B
    mm_dtype = w_h_ref.dtype   # f32 default; bf16 opt-in for native MXU rate

    # ---- In-kernel embedding lookup: one-hot @ table (replaces XLA gather glue).
    tok = tok_ref[...]                                               # (S*B, 1) i32
    iota = lax.broadcasted_iota(jnp.int32, (S_B, V_pad), 1)
    onehot = jnp.where(tok == iota, 1.0, 0.0).astype(mm_dtype)       # (S*B, Vpad)
    x = jnp.dot(onehot, emb_ref[...],
                preferred_element_type=jnp.float32)                  # (S*B, H) f32

    # ---- Hoisted input projection + combined biases for ALL steps: one MXU push.
    gi_all = (jnp.dot(x.astype(mm_dtype), w_i_ref[...],
                      preferred_element_type=jnp.float32)
              + b_gi_ref[...])                                       # (S*B, 3H) f32

    w_h = w_h_ref[...]
    b_hn = b_hn_ref[...]

    # ---- Recurrence, fully unrolled (S is small); only the tiny (B,H)@(H,3H)
    #      gh matmul + gate math remain on the serial dependency chain.
    h = jnp.zeros((B, H), jnp.float32)
    hs = []
    for t in range(S):
        gi_t = gi_all[t * B:(t + 1) * B, :]                          # (B, 3H)
        gh_t = jnp.dot(h.astype(mm_dtype), w_h,
                       preferred_element_type=jnp.float32)           # (B, 3H)
        # One EUP pass for both r and z over the contiguous 2H lanes.
        rz = jax.nn.sigmoid(gi_t[:, 0:2 * H] + gh_t[:, 0:2 * H])
        r = rz[:, 0:H]
        z = rz[:, H:2 * H]
        n = jnp.tanh(gi_t[:, 2 * H:3 * H] + r * (gh_t[:, 2 * H:3 * H] + b_hn))
        h = n + z * (h - n)                                          # == (1-z)*n + z*h
        hs.append(h)

    # ---- Single fc head matmul over the whole sequence (hidden states stayed in
    #      vregs; no VMEM scratch round-trip). O padded to 128 lanes -> dense vst.
    hs_all = jnp.concatenate(hs, axis=0)                             # (S*B, H)
    y = (jnp.dot(hs_all.astype(mm_dtype), w_fc_ref[...],
                 preferred_element_type=jnp.float32) + b_fc_ref[...])
    out_ref[...] = y.astype(out_ref.dtype)
    hN_ref[...] = h.astype(hN_ref.dtype)


def gru_model_forward(tokens, params, *, matmul_dtype=jnp.float32):
    """tokens: (B, S) int32 -> (output (B, S, O), hidden (1, B, H)).

    matmul_dtype=jnp.bfloat16 runs the MXU at native rate (f32 accumulate stays);
    the default f32 matches torch numerics (use it for tight-tolerance checks).
    """
    B, S = tokens.shape
    V, H = params["embedding"].shape
    O = params["w_fc"].shape[0]
    V_pad = max(128, ((V + 127) // 128) * 128)   # lane-aligned one-hot width
    O_pad = max(128, ((O + 127) // 128) * 128)   # lane-dense output width

    # Time-major flattened rows: row t*B + b <-> (batch b, time t). 128-byte int op.
    tok_tm = jnp.transpose(tokens).reshape(S * B, 1).astype(jnp.int32)

    emb_pad = jnp.zeros((V_pad, H), matmul_dtype).at[:V, :].set(
        params["embedding"].astype(matmul_dtype))

    w_ih, w_hh = params["w_ih"], params["w_hh"]              # (3H, H), gate order r,z,n
    b_ih, b_hh = params["b_ih"], params["b_hh"]              # (3H,)

    # Fused, pre-transposed gate weights (x @ W form).
    w_i_all = jnp.transpose(w_ih).astype(matmul_dtype)       # (H, 3H)
    w_h_all = jnp.transpose(w_hh).astype(matmul_dtype)       # (H, 3H)

    # Combined biases: r/z merge input+hidden biases; b_in folds into the hoisted
    # input projection; b_hn must stay separate (inside r*(...)).
    b_gi = jnp.concatenate([b_ih[0:H] + b_hh[0:H],
                            b_ih[H:2 * H] + b_hh[H:2 * H],
                            b_ih[2 * H:3 * H]]).reshape(1, 3 * H).astype(jnp.float32)
    b_hn = b_hh[2 * H:3 * H].reshape(1, H).astype(jnp.float32)

    # fc head, transposed + zero-padded to O_pad lanes.
    w_fc_t = jnp.zeros((H, O_pad), matmul_dtype).at[:, :O].set(
        jnp.transpose(params["w_fc"]).astype(matmul_dtype))
    b_fc_p = jnp.zeros((1, O_pad), jnp.float32).at[:, :O].set(
        params["b_fc"].astype(jnp.float32))

    def full(shape):
        nd = len(shape)
        return pl.BlockSpec(shape, lambda *_: (0,) * nd)

    out2d, h_final = pl.pallas_call(
        gru_fused_kernel,
        out_shape=(jax.ShapeDtypeStruct((S * B, O_pad), jnp.float32),
                   jax.ShapeDtypeStruct((B, H), jnp.float32)),
        grid_spec=pltpu.PrefetchScalarGridSpec(
            num_scalar_prefetch=0,
            grid=(1,),   # single invocation: everything resident in VMEM (<100 KB,
                         # fits v7x's 64 MiB with huge headroom). Keep single-TC at
                         # this size: the recurrence is latency-bound, not throughput.
            in_specs=[full((S * B, 1)),
                      full((V_pad, H)),
                      full((H, 3 * H)), full((H, 3 * H)),
                      full((1, 3 * H)), full((1, H)),
                      full((H, O_pad)), full((1, O_pad))],
            out_specs=(full((S * B, O_pad)), full((B, H))),
        ),
        compiler_params=pltpu.CompilerParams(
            dimension_semantics=("arbitrary",)),
    )(tok_tm, emb_pad, w_i_all, w_h_all, b_gi, b_hn, w_fc_t, b_fc_p)

    output = out2d[:, :O].reshape(S, B, O).transpose(1, 0, 2)   # (B, S, O) batch_first
    hidden = h_final[None]                                      # (num_layers=1, B, H)
    return output, hidden


def gru_model_reference(tokens, params):
    """Pure-JAX reference matching torch.nn.GRU / nn.Linear semantics."""
    emb = params["embedding"][tokens].astype(jnp.float32)
    B, S, H = emb.shape
    w_ih, w_hh = params["w_ih"], params["w_hh"]
    b_ih, b_hh = params["b_ih"], params["b_hh"]

    def step(h, x_t):
        gi = x_t @ w_ih.T + b_ih
        gh = h @ w_hh.T + b_hh
        i_r, i_z, i_n = jnp.split(gi, 3, axis=-1)
        h_r, h_z, h_n = jnp.split(gh, 3, axis=-1)
        r = jax.nn.sigmoid(i_r + h_r)
        z = jax.nn.sigmoid(i_z + h_z)
        n = jnp.tanh(i_n + r * h_n)
        h_new = (1.0 - z) * n + z * h
        return h_new, h_new

    h0 = jnp.zeros((B, H), jnp.float32)
    h_final, hs = lax.scan(step, h0, jnp.transpose(emb, (1, 0, 2)))
    out = jnp.transpose(hs, (1, 0, 2)) @ params["w_fc"].T + params["b_fc"]
    return out, h_final[None]


def init_params(key, input_size, hidden_size, output_size):
    ks = jax.random.split(key, 7)
    k_gru = 1.0 / np.sqrt(hidden_size)
    k_fc = 1.0 / np.sqrt(hidden_size)
    return {
        "embedding": jax.random.normal(ks[0], (input_size, hidden_size), jnp.float32),
        "w_ih": jax.random.uniform(ks[1], (3 * hidden_size, hidden_size),
                                   jnp.float32, -k_gru, k_gru),
        "w_hh": jax.random.uniform(ks[2], (3 * hidden_size, hidden_size),
                                   jnp.float32, -k_gru, k_gru),
        "b_ih": jax.random.uniform(ks[3], (3 * hidden_size,), jnp.float32, -k_gru, k_gru),
        "b_hh": jax.random.uniform(ks[4], (3 * hidden_size,), jnp.float32, -k_gru, k_gru),
        "w_fc": jax.random.uniform(ks[5], (output_size, hidden_size),
                                   jnp.float32, -k_fc, k_fc),
        "b_fc": jax.random.uniform(ks[6], (output_size,), jnp.float32, -k_fc, k_fc),
    }


if __name__ == "__main__":
    INPUT_SIZE = 50     # vocab size
    HIDDEN_SIZE = 32
    OUTPUT_SIZE = 10
    BATCH = 4
    SEQ = 8

    key = jax.random.PRNGKey(0)
    k_params, k_tokens = jax.random.split(key)
    params = init_params(k_params, INPUT_SIZE, HIDDEN_SIZE, OUTPUT_SIZE)
    tokens = jax.random.randint(k_tokens, (BATCH, SEQ), 0, INPUT_SIZE, dtype=jnp.int32)

    out, hidden = jax.jit(gru_model_forward)(tokens, params)
    out = jax.block_until_ready(out)
    hidden = jax.block_until_ready(hidden)

    ref_out, ref_hidden = gru_model_reference(tokens, params)
    # f32 path; 1e-4 leaves margin for EUP-vs-XLA transcendental rounding differences.
    np.testing.assert_allclose(np.asarray(out), np.asarray(ref_out), rtol=1e-4, atol=1e-4)
    np.testing.assert_allclose(np.asarray(hidden), np.asarray(ref_hidden), rtol=1e-4, atol=1e-4)

    assert out.shape == (BATCH, SEQ, OUTPUT_SIZE)
    assert hidden.shape == (1, BATCH, HIDDEN_SIZE)
    print("KERNEL_OK")
</pallas_src>

<mosaic_0001>
module attributes {stable_mosaic.version = 11 : i64} {
  func.func @gru_fused_kernel(%arg0: i32, %arg1: memref<32x1xi32, #tpu.memory_space<vmem>>, %arg2: memref<128x32xf32, #tpu.memory_space<vmem>>, %arg3: memref<32x96xf32, #tpu.memory_space<vmem>>, %arg4: memref<32x96xf32, #tpu.memory_space<vmem>>, %arg5: memref<1x96xf32, #tpu.memory_space<vmem>>, %arg6: memref<1x32xf32, #tpu.memory_space<vmem>>, %arg7: memref<32x128xf32, #tpu.memory_space<vmem>>, %arg8: memref<1x128xf32, #tpu.memory_space<vmem>>, %arg9: memref<32x128xf32, #tpu.memory_space<vmem>>, %arg10: memref<4x32xf32, #tpu.memory_space<vmem>>) attributes {dimension_semantics = [#tpu.dimension_semantics<arbitrary>], iteration_bounds = array<i64: 1>, scalar_prefetch = 0 : i64, scratch_operands = 0 : i64, tpu.core_type = #tpu.core_type<tc>, window_params = [{pipeline_mode = #tpu.pipeline_mode<synchronous>, transform_indices = @transform_0, window_bounds = array<i64: 32, 1>}, {pipeline_mode = #tpu.pipeline_mode<synchronous>, transform_indices = @transform_1, window_bounds = array<i64: 128, 32>}, {pipeline_mode = #tpu.pipeline_mode<synchronous>, transform_indices = @transform_2, window_bounds = array<i64: 32, 96>}, {pipeline_mode = #tpu.pipeline_mode<synchronous>, transform_indices = @transform_3, window_bounds = array<i64: 32, 96>}, {pipeline_mode = #tpu.pipeline_mode<synchronous>, transform_indices = @transform_4, window_bounds = array<i64: 1, 96>}, {pipeline_mode = #tpu.pipeline_mode<synchronous>, transform_indices = @transform_5, window_bounds = array<i64: 1, 32>}, {pipeline_mode = #tpu.pipeline_mode<synchronous>, transform_indices = @transform_6, window_bounds = array<i64: 32, 128>}, {pipeline_mode = #tpu.pipeline_mode<synchronous>, transform_indices = @transform_7, window_bounds = array<i64: 1, 128>}, {pipeline_mode = #tpu.pipeline_mode<synchronous>, transform_indices = @transform_8, window_bounds = array<i64: 32, 128>}, {pipeline_mode = #tpu.pipeline_mode<synchronous>, transform_indices = @transform_9, window_bounds = array<i64: 4, 32>}]} {
    %c0 = arith.constant 0 : index
    %c0_0 = arith.constant 0 : index
    %0 = vector.load %arg1[%c0, %c0_0] : memref<32x1xi32, #tpu.memory_space<vmem>>, vector<32x1xi32>
    %1 = tpu.iota {dimensions = array<i32: 1>} : vector<32x128xi32>
    %2 = vector.broadcast %0 : vector<32x1xi32> to vector<32x128xi32>
    %3 = arith.cmpi eq, %2, %1 : vector<32x128xi32>
    %cst = arith.constant 1.000000e+00 : f32
    %cst_1 = arith.constant 0.000000e+00 : f32
    %4 = vector.broadcast %cst : f32 to vector<32x128xf32>
    %5 = vector.broadcast %cst_1 : f32 to vector<32x128xf32>
    %6 = arith.select %3, %4, %5 : vector<32x128xi1>, vector<32x128xf32>
    %c0_2 = arith.constant 0 : index
    %c0_3 = arith.constant 0 : index
    %7 = vector.load %arg2[%c0_2, %c0_3] : memref<128x32xf32, #tpu.memory_space<vmem>>, vector<128x32xf32>
    %cst_4 = arith.constant dense<0.000000e+00> : vector<32x32xf32>
    %8 = tpu.matmul %6, %7, %cst_4 {dimension_numbers = #tpu.dot_dimension_numbers<[1], [0], [0], [1], [0, 0, 1, 1], [], []>, precision = #tpu.contract_precision<fp32>} : vector<32x128xf32>, vector<128x32xf32>, vector<32x32xf32> -> vector<32x32xf32>
    %c0_5 = arith.constant 0 : index
    %c0_6 = arith.constant 0 : index
    %9 = vector.load %arg3[%c0_5, %c0_6] : memref<32x96xf32, #tpu.memory_space<vmem>>, vector<32x96xf32>
    %cst_7 = arith.constant dense<0.000000e+00> : vector<32x96xf32>
    %10 = tpu.matmul %8, %9, %cst_7 {dimension_numbers = #tpu.dot_dimension_numbers<[1], [0], [0], [1], [0, 0, 1, 1], [], []>, precision = #tpu.contract_precision<fp32>} : vector<32x32xf32>, vector<32x96xf32>, vector<32x96xf32> -> vector<32x96xf32>
    %c0_8 = arith.constant 0 : index
    %c0_9 = arith.constant 0 : index
    %11 = vector.load %arg5[%c0_8, %c0_9] : memref<1x96xf32, #tpu.memory_space<vmem>>, vector<1x96xf32>
    %12 = vector.broadcast %11 : vector<1x96xf32> to vector<32x96xf32>
    %13 = arith.addf %10, %12 : vector<32x96xf32>
    %c0_10 = arith.constant 0 : index
    %c0_11 = arith.constant 0 : index
    %14 = vector.load %arg4[%c0_10, %c0_11] : memref<32x96xf32, #tpu.memory_space<vmem>>, vector<32x96xf32>
    %c0_12 = arith.constant 0 : index
    %c0_13 = arith.constant 0 : index
    %15 = vector.load %arg6[%c0_12, %c0_13] : memref<1x32xf32, #tpu.memory_space<vmem>>, vector<1x32xf32>
    %cst_14 = arith.constant 0.000000e+00 : f32
    %16 = vector.broadcast %cst_14 : f32 to vector<4x32xf32>
    %17 = vector.extract_strided_slice %13 {offsets = [0, 0], sizes = [4, 96], strides = [1, 1]} : vector<32x96xf32> to vector<4x96xf32>
    %cst_15 = arith.constant dense<0.000000e+00> : vector<4x96xf32>
    %18 = tpu.matmul %16, %14, %cst_15 {dimension_numbers = #tpu.dot_dimension_numbers<[1], [0], [0], [1], [0, 0, 1, 1], [], []>, precision = #tpu.contract_precision<fp32>} : vector<4x32xf32>, vector<32x96xf32>, vector<4x96xf32> -> vector<4x96xf32>
    %19 = vector.extract_strided_slice %17 {offsets = [0, 0], sizes = [4, 64], strides = [1, 1]} : vector<4x96xf32> to vector<4x64xf32>
    %20 = vector.extract_strided_slice %18 {offsets = [0, 0], sizes = [4, 64], strides = [1, 1]} : vector<4x96xf32> to vector<4x64xf32>
    %21 = arith.addf %19, %20 : vector<4x64xf32>
    %22 = arith.negf %21 : vector<4x64xf32>
    %23 = math.exp %22 : vector<4x64xf32>
    %cst_16 = arith.constant 1.000000e+00 : f32
    %24 = vector.broadcast %cst_16 : f32 to vector<4x64xf32>
    %25 = arith.addf %24, %23 : vector<4x64xf32>
    %26 = arith.divf %24, %25 : vector<4x64xf32>
    %27 = vector.extract_strided_slice %26 {offsets = [0, 0], sizes = [4, 32], strides = [1, 1]} : vector<4x64xf32> to vector<4x32xf32>
    %28 = vector.extract_strided_slice %26 {offsets = [0, 32], sizes = [4, 32], strides = [1, 1]} : vector<4x64xf32> to vector<4x32xf32>
    %29 = vector.extract_strided_slice %17 {offsets = [0, 64], sizes = [4, 32], strides = [1, 1]} : vector<4x96xf32> to vector<4x32xf32>
    %30 = vector.extract_strided_slice %18 {offsets = [0, 64], sizes = [4, 32], strides = [1, 1]} : vector<4x96xf32> to vector<4x32xf32>
    %31 = vector.broadcast %15 : vector<1x32xf32> to vector<4x32xf32>
    %32 = arith.addf %30, %31 : vector<4x32xf32>
    %33 = arith.mulf %27, %32 : vector<4x32xf32>
    %34 = arith.addf %29, %33 : vector<4x32xf32>
    %35 = math.tanh %34 : vector<4x32xf32>
    %36 = arith.subf %16, %35 : vector<4x32xf32>
    %37 = arith.mulf %28, %36 : vector<4x32xf32>
    %38 = arith.addf %35, %37 : vector<4x32xf32>
    %39 = vector.extract_strided_slice %13 {offsets = [4, 0], sizes = [4, 96], strides = [1, 1]} : vector<32x96xf32> to vector<4x96xf32>
    %cst_17 = arith.constant dense<0.000000e+00> : vector<4x96xf32>
    %40 = tpu.matmul %38, %14, %cst_17 {dimension_numbers = #tpu.dot_dimension_numbers<[1], [0], [0], [1], [0, 0, 1, 1], [], []>, precision = #tpu.contract_precision<fp32>} : vector<4x32xf32>, vector<32x96xf32>, vector<4x96xf32> -> vector<4x96xf32>
    %41 = vector.extract_strided_slice %39 {offsets = [0, 0], sizes = [4, 64], strides = [1, 1]} : vector<4x96xf32> to vector<4x64xf32>
    %42 = vector.extract_strided_slice %40 {offsets = [0, 0], sizes = [4, 64], strides = [1, 1]} : vector<4x96xf32> to vector<4x64xf32>
    %43 = arith.addf %41, %42 : vector<4x64xf32>
    %44 = arith.negf %43 : vector<4x64xf32>
    %45 = math.exp %44 : vector<4x64xf32>
    %cst_18 = arith.constant 1.000000e+00 : f32
    %46 = vector.broadcast %cst_18 : f32 to vector<4x64xf32>
    %47 = arith.addf %46, %45 : vector<4x64xf32>
    %48 = arith.divf %46, %47 : vector<4x64xf32>
    %49 = vector.extract_strided_slice %48 {offsets = [0, 0], sizes = [4, 32], strides = [1, 1]} : vector<4x64xf32> to vector<4x32xf32>
    %50 = vector.extract_strided_slice %48 {offsets = [0, 32], sizes = [4, 32], strides = [1, 1]} : vector<4x64xf32> to vector<4x32xf32>
    %51 = vector.extract_strided_slice %39 {offsets = [0, 64], sizes = [4, 32], strides = [1, 1]} : vector<4x96xf32> to vector<4x32xf32>
    %52 = vector.extract_strided_slice %40 {offsets = [0, 64], sizes = [4, 32], strides = [1, 1]} : vector<4x96xf32> to vector<4x32xf32>
    %53 = vector.broadcast %15 : vector<1x32xf32> to vector<4x32xf32>
    %54 = arith.addf %52, %53 : vector<4x32xf32>
    %55 = arith.mulf %49, %54 : vector<4x32xf32>
    %56 = arith.addf %51, %55 : vector<4x32xf32>
    %57 = math.tanh %56 : vector<4x32xf32>
    %58 = arith.subf %38, %57 : vector<4x32xf32>
    %59 = arith.mulf %50, %58 : vector<4x32xf32>
    %60 = arith.addf %57, %59 : vector<4x32xf32>
    %61 = vector.extract_strided_slice %13 {offsets = [8, 0], sizes = [4, 96], strides = [1, 1]} : vector<32x96xf32> to vector<4x96xf32>
    %cst_19 = arith.constant dense<0.000000e+00> : vector<4x96xf32>
    %62 = tpu.matmul %60, %14, %cst_19 {dimension_numbers = #tpu.dot_dimension_numbers<[1], [0], [0], [1], [0, 0, 1, 1], [], []>, precision = #tpu.contract_precision<fp32>} : vector<4x32xf32>, vector<32x96xf32>, vector<4x96xf32> -> vector<4x96xf32>
    %63 = vector.extract_strided_slice %61 {offsets = [0, 0], sizes = [4, 64], strides = [1, 1]} : vector<4x96xf32> to vector<4x64xf32>
    %64 = vector.extract_strided_slice %62 {offsets = [0, 0], sizes = [4, 64], strides = [1, 1]} : vector<4x96xf32> to vector<4x64xf32>
    %65 = arith.addf %63, %64 : vector<4x64xf32>
    %66 = arith.negf %65 : vector<4x64xf32>
    %67 = math.exp %66 : vector<4x64xf32>
    %cst_20 = arith.constant 1.000000e+00 : f32
    %68 = vector.broadcast %cst_20 : f32 to vector<4x64xf32>
    %69 = arith.addf %68, %67 : vector<4x64xf32>
    %70 = arith.divf %68, %69 : vector<4x64xf32>
    %71 = vector.extract_strided_slice %70 {offsets = [0, 0], sizes = [4, 32], strides = [1, 1]} : vector<4x64xf32> to vector<4x32xf32>
    %72 = vector.extract_strided_slice %70 {offsets = [0, 32], sizes = [4, 32], strides = [1, 1]} : vector<4x64xf32> to vector<4x32xf32>
    %73 = vector.extract_strided_slice %61 {offsets = [0, 64], sizes = [4, 32], strides = [1, 1]} : vector<4x96xf32> to vector<4x32xf32>
    %74 = vector.extract_strided_slice %62 {offsets = [0, 64], sizes = [4, 32], strides = [1, 1]} : vector<4x96xf32> to vector<4x32xf32>
    %75 = vector.broadcast %15 : vector<1x32xf32> to vector<4x32xf32>
    %76 = arith.addf %74, %75 : vector<4x32xf32>
    %77 = arith.mulf %71, %76 : vector<4x32xf32>
    %78 = arith.addf %73, %77 : vector<4x32xf32>
    %79 = math.tanh %78 : vector<4x32xf32>
    %80 = arith.subf %60, %79 : vector<4x32xf32>
    %81 = arith.mulf %72, %80 : vector<4x32xf32>
    %82 = arith.addf %79, %81 : vector<4x32xf32>
    %83 = vector.extract_strided_slice %13 {offsets = [12, 0], sizes = [4, 96], strides = [1, 1]} : vector<32x96xf32> to vector<4x96xf32>
    %cst_21 = arith.constant dense<0.000000e+00> : vector<4x96xf32>
    %84 = tpu.matmul %82, %14, %cst_21 {dimension_numbers = #tpu.dot_dimension_numbers<[1], [0], [0], [1], [0, 0, 1, 1], [], []>, precision = #tpu.contract_precision<fp32>} : vector<4x32xf32>, vector<32x96xf32>, vector<4x96xf32> -> vector<4x96xf32>
    %85 = vector.extract_strided_slice %83 {offsets = [0, 0], sizes = [4, 64], strides = [1, 1]} : vector<4x96xf32> to vector<4x64xf32>
    %86 = vector.extract_strided_slice %84 {offsets = [0, 0], sizes = [4, 64], strides = [1, 1]} : vector<4x96xf32> to vector<4x64xf32>
    %87 = arith.addf %85, %86 : vector<4x64xf32>
    %88 = arith.negf %87 : vector<4x64xf32>
    %89 = math.exp %88 : vector<4x64xf32>
    %cst_22 = arith.constant 1.000000e+00 : f32
    %90 = vector.broadcast %cst_22 : f32 to vector<4x64xf32>
    %91 = arith.addf %90, %89 : vector<4x64xf32>
    %92 = arith.divf %90, %91 : vector<4x64xf32>
    %93 = vector.extract_strided_slice %92 {offsets = [0, 0], sizes = [4, 32], strides = [1, 1]} : vector<4x64xf32> to vector<4x32xf32>
    %94 = vector.extract_strided_slice %92 {offsets = [0, 32], sizes = [4, 32], strides = [1, 1]} : vector<4x64xf32> to vector<4x32xf32>
    %95 = vector.extract_strided_slice %83 {offsets = [0, 64], sizes = [4, 32], strides = [1, 1]} : vector<4x96xf32> to vector<4x32xf32>
    %96 = vector.extract_strided_slice %84 {offsets = [0, 64], sizes = [4, 32], strides = [1, 1]} : vector<4x96xf32> to vector<4x32xf32>
    %97 = vector.broadcast %15 : vector<1x32xf32> to vector<4x32xf32>
    %98 = arith.addf %96, %97 : vector<4x32xf32>
    %99 = arith.mulf %93, %98 : vector<4x32xf32>
    %100 = arith.addf %95, %99 : vector<4x32xf32>
    %101 = math.tanh %100 : vector<4x32xf32>
    %102 = arith.subf %82, %101 : vector<4x32xf32>
    %103 = arith.mulf %94, %102 : vector<4x32xf32>
    %104 = arith.addf %101, %103 : vector<4x32xf32>
    %105 = vector.extract_strided_slice %13 {offsets = [16, 0], sizes = [4, 96], strides = [1, 1]} : vector<32x96xf32> to vector<4x96xf32>
    %cst_23 = arith.constant dense<0.000000e+00> : vector<4x96xf32>
    %106 = tpu.matmul %104, %14, %cst_23 {dimension_numbers = #tpu.dot_dimension_numbers<[1], [0], [0], [1], [0, 0, 1, 1], [], []>, precision = #tpu.contract_precision<fp32>} : vector<4x32xf32>, vector<32x96xf32>, vector<4x96xf32> -> vector<4x96xf32>
    %107 = vector.extract_strided_slice %105 {offsets = [0, 0], sizes = [4, 64], strides = [1, 1]} : vector<4x96xf32> to vector<4x64xf32>
    %108 = vector.extract_strided_slice %106 {offsets = [0, 0], sizes = [4, 64], strides = [1, 1]} : vector<4x96xf32> to vector<4x64xf32>
    %109 = arith.addf %107, %108 : vector<4x64xf32>
    %110 = arith.negf %109 : vector<4x64xf32>
    %111 = math.exp %110 : vector<4x64xf32>
    %cst_24 = arith.constant 1.000000e+00 : f32
    %112 = vector.broadcast %cst_24 : f32 to vector<4x64xf32>
    %113 = arith.addf %112, %111 : vector<4x64xf32>
    %114 = arith.divf %112, %113 : vector<4x64xf32>
    %115 = vector.extract_strided_slice %114 {offsets = [0, 0], sizes = [4, 32], strides = [1, 1]} : vector<4x64xf32> to vector<4x32xf32>
    %116 = vector.extract_strided_slice %114 {offsets = [0, 32], sizes = [4, 32], strides = [1, 1]} : vector<4x64xf32> to vector<4x32xf32>
    %117 = vector.extract_strided_slice %105 {offsets = [0, 64], sizes = [4, 32], strides = [1, 1]} : vector<4x96xf32> to vector<4x32xf32>
    %118 = vector.extract_strided_slice %106 {offsets = [0, 64], sizes = [4, 32], strides = [1, 1]} : vector<4x96xf32> to vector<4x32xf32>
    %119 = vector.broadcast %15 : vector<1x32xf32> to vector<4x32xf32>
    %120 = arith.addf %118, %119 : vector<4x32xf32>
    %121 = arith.mulf %115, %120 : vector<4x32xf32>
    %122 = arith.addf %117, %121 : vector<4x32xf32>
    %123 = math.tanh %122 : vector<4x32xf32>
    %124 = arith.subf %104, %123 : vector<4x32xf32>
    %125 = arith.mulf %116, %124 : vector<4x32xf32>
    %126 = arith.addf %123, %125 : vector<4x32xf32>
    %127 = vector.extract_strided_slice %13 {offsets = [20, 0], sizes = [4, 96], strides = [1, 1]} : vector<32x96xf32> to vector<4x96xf32>
    %cst_25 = arith.constant dense<0.000000e+00> : vector<4x96xf32>
    %128 = tpu.matmul %126, %14, %cst_25 {dimension_numbers = #tpu.dot_dimension_numbers<[1], [0], [0], [1], [0, 0, 1, 1], [], []>, precision = #tpu.contract_precision<fp32>} : vector<4x32xf32>, vector<32x96xf32>, vector<4x96xf32> -> vector<4x96xf32>
    %129 = vector.extract_strided_slice %127 {offsets = [0, 0], sizes = [4, 64], strides = [1, 1]} : vector<4x96xf32> to vector<4x64xf32>
    %130 = vector.extract_strided_slice %128 {offsets = [0, 0], sizes = [4, 64], strides = [1, 1]} : vector<4x96xf32> to vector<4x64xf32>
    %131 = arith.addf %129, %130 : vector<4x64xf32>
    %132 = arith.negf %131 : vector<4x64xf32>
    %133 = math.exp %132 : vector<4x64xf32>
    %cst_26 = arith.constant 1.000000e+00 : f32
    %134 = vector.broadcast %cst_26 : f32 to vector<4x64xf32>
    %135 = arith.addf %134, %133 : vector<4x64xf32>
    %136 = arith.divf %134, %135 : vector<4x64xf32>
    %137 = vector.extract_strided_slice %136 {offsets = [0, 0], sizes = [4, 32], strides = [1, 1]} : vector<4x64xf32> to vector<4x32xf32>
    %138 = vector.extract_strided_slice %136 {offsets = [0, 32], sizes = [4, 32], strides = [1, 1]} : vector<4x64xf32> to vector<4x32xf32>
    %139 = vector.extract_strided_slice %127 {offsets = [0, 64], sizes = [4, 32], strides = [1, 1]} : vector<4x96xf32> to vector<4x32xf32>
    %140 = vector.extract_strided_slice %128 {offsets = [0, 64], sizes = [4, 32], strides = [1, 1]} : vector<4x96xf32> to vector<4x32xf32>
    %141 = vector.broadcast %15 : vector<1x32xf32> to vector<4x32xf32>
    %142 = arith.addf %140, %141 : vector<4x32xf32>
    %143 = arith.mulf %137, %142 : vector<4x32xf32>
    %144 = arith.addf %139, %143 : vector<4x32xf32>
    %145 = math.tanh %144 : vector<4x32xf32>
    %146 = arith.subf %126, %145 : vector<4x32xf32>
    %147 = arith.mulf %138, %146 : vector<4x32xf32>
    %148 = arith.addf %145, %147 : vector<4x32xf32>
    %149 = vector.extract_strided_slice %13 {offsets = [24, 0], sizes = [4, 96], strides = [1, 1]} : vector<32x96xf32> to vector<4x96xf32>
    %cst_27 = arith.constant dense<0.000000e+00> : vector<4x96xf32>
    %150 = tpu.matmul %148, %14, %cst_27 {dimension_numbers = #tpu.dot_dimension_numbers<[1], [0], [0], [1], [0, 0, 1, 1], [], []>, precision = #tpu.contract_precision<fp32>} : vector<4x32xf32>, vector<32x96xf32>, vector<4x96xf32> -> vector<4x96xf32>
    %151 = vector.extract_strided_slice %149 {offsets = [0, 0], sizes = [4, 64], strides = [1, 1]} : vector<4x96xf32> to vector<4x64xf32>
    %152 = vector.extract_strided_slice %150 {offsets = [0, 0], sizes = [4, 64], strides = [1, 1]} : vector<4x96xf32> to vector<4x64xf32>
    %153 = arith.addf %151, %152 : vector<4x64xf32>
    %154 = arith.negf %153 : vector<4x64xf32>
    %155 = math.exp %154 : vector<4x64xf32>
    %cst_28 = arith.constant 1.000000e+00 : f32
    %156 = vector.broadcast %cst_28 : f32 to vector<4x64xf32>
    %157 = arith.addf %156, %155 : vector<4x64xf32>
    %158 = arith.divf %156, %157 : vector<4x64xf32>
    %159 = vector.extract_strided_slice %158 {offsets = [0, 0], sizes = [4, 32], strides = [1, 1]} : vector<4x64xf32> to vector<4x32xf32>
    %160 = vector.extract_strided_slice %158 {offsets = [0, 32], sizes = [4, 32], strides = [1, 1]} : vector<4x64xf32> to vector<4x32xf32>
    %161 = vector.extract_strided_slice %149 {offsets = [0, 64], sizes = [4, 32], strides = [1, 1]} : vector<4x96xf32> to vector<4x32xf32>
    %162 = vector.extract_strided_slice %150 {offsets = [0, 64], sizes = [4, 32], strides = [1, 1]} : vector<4x96xf32> to vector<4x32xf32>
    %163 = vector.broadcast %15 : vector<1x32xf32> to vector<4x32xf32>
    %164 = arith.addf %162, %163 : vector<4x32xf32>
    %165 = arith.mulf %159, %164 : vector<4x32xf32>
    %166 = arith.addf %161, %165 : vector<4x32xf32>
    %167 = math.tanh %166 : vector<4x32xf32>
    %168 = arith.subf %148, %167 : vector<4x32xf32>
    %169 = arith.mulf %160, %168 : vector<4x32xf32>
    %170 = arith.addf %167, %169 : vector<4x32xf32>
    %171 = vector.extract_strided_slice %13 {offsets = [28, 0], sizes = [4, 96], strides = [1, 1]} : vector<32x96xf32> to vector<4x96xf32>
    %cst_29 = arith.constant dense<0.000000e+00> : vector<4x96xf32>
    %172 = tpu.matmul %170, %14, %cst_29 {dimension_numbers = #tpu.dot_dimension_numbers<[1], [0], [0], [1], [0, 0, 1, 1], [], []>, precision = #tpu.contract_precision<fp32>} : vector<4x32xf32>, vector<32x96xf32>, vector<4x96xf32> -> vector<4x96xf32>
    %173 = vector.extract_strided_slice %171 {offsets = [0, 0], sizes = [4, 64], strides = [1, 1]} : vector<4x96xf32> to vector<4x64xf32>
    %174 = vector.extract_strided_slice %172 {offsets = [0, 0], sizes = [4, 64], strides = [1, 1]} : vector<4x96xf32> to vector<4x64xf32>
    %175 = arith.addf %173, %174 : vector<4x64xf32>
    %176 = arith.negf %175 : vector<4x64xf32>
    %177 = math.exp %176 : vector<4x64xf32>
    %cst_30 = arith.constant 1.000000e+00 : f32
    %178 = vector.broadcast %cst_30 : f32 to vector<4x64xf32>
    %179 = arith.addf %178, %177 : vector<4x64xf32>
    %180 = arith.divf %178, %179 : vector<4x64xf32>
    %181 = vector.extract_strided_slice %180 {offsets = [0, 0], sizes = [4, 32], strides = [1, 1]} : vector<4x64xf32> to vector<4x32xf32>
    %182 = vector.extract_strided_slice %180 {offsets = [0, 32], sizes = [4, 32], strides = [1, 1]} : vector<4x64xf32> to vector<4x32xf32>
    %183 = vector.extract_strided_slice %171 {offsets = [0, 64], sizes = [4, 32], strides = [1, 1]} : vector<4x96xf32> to vector<4x32xf32>
    %184 = vector.extract_strided_slice %172 {offsets = [0, 64], sizes = [4, 32], strides = [1, 1]} : vector<4x96xf32> to vector<4x32xf32>
    %185 = vector.broadcast %15 : vector<1x32xf32> to vector<4x32xf32>
    %186 = arith.addf %184, %185 : vector<4x32xf32>
    %187 = arith.mulf %181, %186 : vector<4x32xf32>
    %188 = arith.addf %183, %187 : vector<4x32xf32>
    %189 = math.tanh %188 : vector<4x32xf32>
    %190 = arith.subf %170, %189 : vector<4x32xf32>
    %191 = arith.mulf %182, %190 : vector<4x32xf32>
    %192 = arith.addf %189, %191 : vector<4x32xf32>
    %193 = tpu.concatenate %38, %60, %82, %104, %126, %148, %170, %192 in 0 : vector<4x32xf32>, vector<4x32xf32>, vector<4x32xf32>, vector<4x32xf32>, vector<4x32xf32>, vector<4x32xf32>, vector<4x32xf32>, vector<4x32xf32> -> vector<32x32xf32>
    %c0_31 = arith.constant 0 : index
    %c0_32 = arith.constant 0 : index
    %194 = vector.load %arg7[%c0_31, %c0_32] : memref<32x128xf32, #tpu.memory_space<vmem>>, vector<32x128xf32>
    %cst_33 = arith.constant dense<0.000000e+00> : vector<32x128xf32>
    %195 = tpu.matmul %193, %194, %cst_33 {dimension_numbers = #tpu.dot_dimension_numbers<[1], [0], [0], [1], [0, 0, 1, 1], [], []>, precision = #tpu.contract_precision<fp32>} : vector<32x32xf32>, vector<32x128xf32>, vector<32x128xf32> -> vector<32x128xf32>
    %c0_34 = arith.constant 0 : index
    %c0_35 = arith.constant 0 : index
    %196 = vector.load %arg8[%c0_34, %c0_35] : memref<1x128xf32, #tpu.memory_space<vmem>>, vector<1x128xf32>
    %197 = vector.broadcast %196 : vector<1x128xf32> to vector<32x128xf32>
    %198 = arith.addf %195, %197 : vector<32x128xf32>
    %c0_36 = arith.constant 0 : index
    %c0_37 = arith.constant 0 : index
    %199 = vector.load %arg9[%c0_36, %c0_37] : memref<32x128xf32, #tpu.memory_space<vmem>>, vector<32x128xf32>
    tpu.vector_store %arg9[%c0_36, %c0_37], %198 {strides = array<i32>} : memref<32x128xf32, #tpu.memory_space<vmem>>, vector<32x128xf32>,
    %c0_38 = arith.constant 0 : index
    %c0_39 = arith.constant 0 : index
    %200 = vector.load %arg10[%c0_38, %c0_39] : memref<4x32xf32, #tpu.memory_space<vmem>>, vector<4x32xf32>
    tpu.vector_store %arg10[%c0_38, %c0_39], %192 {strides = array<i32>} : memref<4x32xf32, #tpu.memory_space<vmem>>, vector<4x32xf32>,
    return
  }
  func.func @transform_0(%arg0: i32) -> (i32, i32) {
    %c0_i32 = arith.constant 0 : i32
    %c0_i32_0 = arith.constant 0 : i32
    %c0_i32_1 = arith.constant 0 : i32
    return %c0_i32, %c0_i32_0 : i32, i32
  }
  func.func @transform_1(%arg0: i32) -> (i32, i32) {
    %c0_i32 = arith.constant 0 : i32
    %c0_i32_0 = arith.constant 0 : i32
    %c0_i32_1 = arith.constant 0 : i32
    return %c0_i32, %c0_i32_0 : i32, i32
  }
  func.func @transform_2(%arg0: i32) -> (i32, i32) {
    %c0_i32 = arith.constant 0 : i32
    %c0_i32_0 = arith.constant 0 : i32
    %c0_i32_1 = arith.constant 0 : i32
    return %c0_i32, %c0_i32_0 : i32, i32
  }
  func.func @transform_3(%arg0: i32) -> (i32, i32) {
    %c0_i32 = arith.constant 0 : i32
    %c0_i32_0 = arith.constant 0 : i32
    %c0_i32_1 = arith.constant 0 : i32
    return %c0_i32, %c0_i32_0 : i32, i32
  }
  func.func @transform_4(%arg0: i32) -> (i32, i32) {
    %c0_i32 = arith.constant 0 : i32
    %c0_i32_0 = arith.constant 0 : i32
    %c0_i32_1 = arith.constant 0 : i32
    return %c0_i32, %c0_i32_0 : i32, i32
  }
  func.func @transform_5(%arg0: i32) -> (i32, i32) {
    %c0_i32 = arith.constant 0 : i32
    %c0_i32_0 = arith.constant 0 : i32
    %c0_i32_1 = arith.constant 0 : i32
    return %c0_i32, %c0_i32_0 : i32, i32
  }
  func.func @transform_6(%arg0: i32) -> (i32, i32) {
    %c0_i32 = arith.constant 0 : i32
    %c0_i32_0 = arith.constant 0 : i32
    %c0_i32_1 = arith.constant 0 : i32
    return %c0_i32, %c0_i32_0 : i32, i32
  }
  func.func @transform_7(%arg0: i32) -> (i32, i32) {
    %c0_i32 = arith.constant 0 : i32
    %c0_i32_0 = arith.constant 0 : i32
    %c0_i32_1 = arith.constant 0 : i32
    return %c0_i32, %c0_i32_0 : i32, i32
  }
  func.func @transform_8(%arg0: i32) -> (i32, i32) {
    %c0_i32 = arith.constant 0 : i32
    %c0_i32_0 = arith.constant 0 : i32
    %c0_i32_1 = arith.constant 0 : i32
    return %c0_i32, %c0_i32_0 : i32, i32
  }
  func.func @transform_9(%arg0: i32) -> (i32, i32) {
    %c0_i32 = arith.constant 0 : i32
    %c0_i32_0 = arith.constant 0 : i32
    %c0_i32_1 = arith.constant 0 : i32
    return %c0_i32, %c0_i32_0 : i32, i32
  }
}

</mosaic_0001>

<bundles_post_ra>
// kernel: gru_model_forward.1
= control target key start
LH: loop header
LB: loop body
LE: loop exit
PB: predicated region body
PF: predicated region fallthrough
CT: control target
= control target key end

     0   :  { %v7837_v2 = vmov 0   ;;  %s9332_s0 = inlined_call_operand.vmem [shape: s32[32,1], index: 0, kind: input, shape index: {}]   ;;  %s9333_s1 = inlined_call_operand.vmem [shape: f32[128,32], index: 1, kind: input, shape index: {}]   ;;  %s9334_s2 = inlined_call_operand.vmem [shape: f32[32,96], index: 2, kind: input, shape index: {}]   ;;  %s9335_s3 = inlined_call_operand.vmem [shape: f32[32,96], index: 3, kind: input, shape index: {}]   ;;  %s9336_s4 = inlined_call_operand.vmem [shape: f32[1,96], index: 4, kind: input, shape index: {}]   ;;  %s9337_s5 = inlined_call_operand.vmem [shape: f32[1,32], index: 5, kind: input, shape index: {}]   ;;  %s9338_s6 = inlined_call_operand.vmem [shape: f32[32,128], index: 6, kind: input, shape index: {}]   ;;  %s9339_s7 = inlined_call_operand.vmem [shape: f32[1,128], index: 7, kind: input, shape index: {}]   ;;  %s9340_s8 = inlined_call_operand.vmem [shape: f32[32,128], index: 8, kind: output, shape index: {0}]   ;;  %s9341_s9 = inlined_call_operand.hbm [shape: f32[4,32], index: 9, kind: output, shape index: {1}]  }
   0x1   :  { %v32_v0 = vld [vmem:[%s9332_s0] sm:$0xff]  ;;  %v34_v1 = vld [vmem:[%s9332_s0 + $0x10] sm:$0xff]  ;;  %7765 = vset.pattern.permute.xlu0 %v7837_v2  ;;  %7766 = vset.pattern.permute.xlu1 %v7837_v2  ;;  %v33_v3 = vld [vmem:[%s9332_s0 + $0x8] sm:$0xff] }
   0x2   :  { %v35_v4 = vld [vmem:[%s9332_s0 + $0x18] sm:$0xff]  ;;  %v72_v6 = vld [vmem:[%s9333_s1 + $0x70] sm:$0xff]  ;;  %39 = vperm.xlu0 %7765, %v32_v0   ;;  %45 = vperm.xlu1 %7766, %v34_v1   ;;  %v71_v9 = vld [vmem:[%s9333_s1 + $0x68] sm:$0xff] }
   0x3   :  { %v73_v5 = vld [vmem:[%s9333_s1 + $0x78] sm:$0xff]  ;;  %v7915_v8 = vand.u32 4294901760, %v72_v6  ;;  %v70_v10 = vld [vmem:[%s9333_s1 + $0x60] sm:$0xff]  ;;  %v7926_v12 = vand.u32 4294901760, %v71_v9  ;;  %v68_v15 = vld [vmem:[%s9333_s1 + $0x50] sm:$0xff] }
   0x4   :  { %v7913_v7 = vand.u32 4294901760, %v73_v5  ;;  %v69_v11 = vld [vmem:[%s9333_s1 + $0x58] sm:$0xff]  ;;  %v7928_v13 = vand.u32 4294901760, %v70_v10  ;;  %v67_v16 = vld [vmem:[%s9333_s1 + $0x48] sm:$0xff]  ;;  %v66_v17 = vld [vmem:[%s9333_s1 + $0x40] sm:$0xff]  ;;  %v7948_v20 = vand.u32 4294901760, %v68_v15 }
   0x5   :  { %v7930_v14 = vand.u32 4294901760, %v69_v11  ;;  %v7945_v19 = vsub.f32 %v72_v6, %v7915_v8  ;;  %v7950_v21 = vand.u32 4294901760, %v67_v16  ;;  %v7953_v22 = vsub.f32 %v71_v9, %v7926_v12 }
   0x6   :  { %v7942_v18 = vsub.f32 %v73_v5, %v7913_v7  ;;  %6833 = vmatprep.subr.mxu0 %v7913_v7  ;;  %v7956_v23 = vsub.f32 %v70_v10, %v7928_v13  ;;  %v7962_v25 = vand.u32 4294901760, %v66_v17  ;;  %42 = vperm.xlu0 %7765, %v33_v3   ;;  %v7971_v28 = vsub.f32 %v68_v15, %v7948_v20 }
   0x7   :  { %v7959_v24 = vsub.f32 %v69_v11, %v7930_v14  ;;  %6834 = vmatpush3.msra.mxu0 %v7913_v7  ;;  %48 = vperm.xlu1 %7766, %v35_v4   ;;  %v7968_v27 = vand.u32 4294901760, %v7945_v19 }
   0x8   :  { %v7965_v26 = vand.u32 4294901760, %v7942_v18 }
   0x9   :  { %15 = vsyncpa [#allocation3], 0  ;;  %v7974_v29 = vand.u32 4294901760, %v7953_v22  ;;  %v7977_v30 = vand.u32 4294901760, %v7956_v23  ;;  %6835 = vmatprep.subr.mxu0 %v7915_v8  ;;  %v7981_v31 = vsub.f32 %v67_v16, %v7950_v21  ;;  %v202_v33 = vsub.f32 %v7945_v19, %v7968_v27  ;;  %v65_v38 = vld [vmem:[%s9333_s1 + $0x38] sm:$0xff]  ;;  %v64_v39 = vld [vmem:[%s9333_s1 + $0x30] sm:$0xff] }
   0xa   :  { %v195_v32 = vsub.f32 %v7942_v18, %v7965_v26  ;;  %v7988_v34 = vand.u32 4294901760, %v7959_v24  ;;  %6836 = vmatpush3.msra.mxu0 %v7915_v8  ;;  %v7994_v36 = vand.u32 4294901760, %v7971_v28  ;;  %v7998_v37 = vsub.f32 %v66_v17, %v7962_v25  ;;  %v63_v43 = vld [vmem:[%s9333_s1 + $0x28] sm:$0xff]  ;;  %v62_v45 = vld [vmem:[%s9333_s1 + $0x20] sm:$0xff]  ;;  %v61_v53 = vld [vmem:[%s9333_s1 + $0x18] sm:$0xff]  ;;  %s7840_s13 = smov 64  }
   0xb   :  { %v209_v35 = vsub.f32 %v7953_v22, %v7974_v29  ;;  %6837 = vmatprep.subr.mxu0 %v7926_v12  ;;  %v203_v41 = vand.u32 4294901760, %v202_v33  ;;  %v216_v42 = vsub.f32 %v7956_v23, %v7977_v30  ;;  %v8013_v44 = vand.u32 4294901760, %v7981_v31  ;;  %v60_v59 = vld [vmem:[%s9333_s1 + $0x10] sm:$0xff]  ;;  %v59_v1 = vld [vmem:[%s9333_s1 + $0x8] sm:$0xff]  ;;  %v58_v9 = vld [vmem:[%s9333_s1] sm:$0xff]  ;;  %s7843_s22 = smov 32  }
   0xc   :  { %v196_v40 = vand.u32 4294901760, %v195_v32  ;;  %6838 = vmatpush3.msra.mxu0 %v7926_v12  ;;  %v223_v47 = vsub.f32 %v7959_v24, %v7988_v34  ;;  %v8022_v48 = vand.u32 4294901760, %v65_v38  ;;  %v8024_v49 = vand.u32 4294901760, %v64_v39 }
   0xd   :  { %6839 = vmatprep.subr.mxu0 %v7928_v13  ;;  %v210_v46 = vand.u32 4294901760, %v209_v35  ;;  %v230_v50 = vsub.f32 %v7971_v28, %v7994_v36  ;;  %v8029_v51 = vand.u32 4294901760, %v7998_v37  ;;  %v8032_v52 = vand.u32 4294901760, %v63_v43 }
   0xe   :  { %6871 = vmatprep.subr.mxu1 %v196_v40  ;;  %6840 = vmatpush3.msra.mxu0 %v7928_v13  ;;  %v217_v54 = vand.u32 4294901760, %v216_v42  ;;  %v8038_v55 = vsub.f32 %v65_v38, %v8022_v48  ;;  %v8042_v56 = vsub.f32 %v64_v39, %v8024_v49  ;;  %v8044_v57 = vand.u32 4294901760, %v62_v45 }
   0xf   :  { %6872 = vmatpush3.msra.mxu1 %v196_v40  ;;  %6841 = vmatprep.subr.mxu0 %v7930_v14  ;;  %v237_v58 = vsub.f32 %v7981_v31, %v8013_v44  ;;  %v224_v60 = vand.u32 4294901760, %v223_v47  ;;  %v8057_v62 = vsub.f32 %v63_v43, %v8032_v52  ;;  %v8059_v63 = vand.u32 4294901760, %v61_v53 }
  0x10   :  { %6873 = vmatprep.subr.mxu1 %v203_v41  ;;  %6842 = vmatpush3.msra.mxu0 %v7930_v14  ;;  %v8053_v61 = vand.u32 4294901760, %v8038_v55  ;;  %v244_v0 = vsub.f32 %v7998_v37, %v8029_v51  ;;  %v231_v2 = vand.u32 4294901760, %v230_v50  ;;  %v8068_v3 = vand.u32 4294901760, %v8042_v56 }
  0x11   :  { %6874 = vmatpush3.msra.mxu1 %v203_v41  ;;  %6843 = vmatprep.subr.mxu0 %v7948_v20  ;;  %v8072_v4 = vsub.f32 %v62_v45, %v8044_v57  ;;  %v8074_v5 = vand.u32 4294901760, %v60_v59  ;;  %v238_v6 = vand.u32 4294901760, %v237_v58  ;;  %v8083_v11 = vand.u32 4294901760, %v8057_v62 }
  0x12   :  { %6875 = vmatprep.subr.mxu1 %v210_v46  ;;  %6844 = vmatpush3.msra.mxu0 %v7948_v20  ;;  %v251_v10 = vsub.f32 %v8038_v55, %v8053_v61  ;;  %v8087_v15 = vsub.f32 %v61_v53, %v8059_v63  ;;  %v8089_v16 = vand.u32 4294901760, %v59_v1  ;;  %v245_v17 = vand.u32 4294901760, %v244_v0 }
  0x13   :  { %6876 = vmatpush3.msra.mxu1 %v210_v46  ;;  %6845 = vmatprep.subr.mxu0 %v7950_v21  ;;  %v258_v32 = vsub.f32 %v8042_v56, %v8068_v3  ;;  %v8095_v33 = vand.u32 4294901760, %v8072_v4  ;;  %v8099_v35 = vsub.f32 %v60_v59, %v8074_v5  ;;  %v8101_v38 = vand.u32 4294901760, %v58_v9 }
  0x14   :  { %6877 = vmatprep.subr.mxu1 %v217_v54  ;;  %6846 = vmatpush3.msra.mxu0 %v7950_v21  ;;  %v252_v39 = vand.u32 4294901760, %v251_v10  ;;  %v265_v40 = vsub.f32 %v8057_v62, %v8083_v11  ;;  %v8107_v41 = vand.u32 4294901760, %v8087_v15  ;;  %v8111_v42 = vsub.f32 %v59_v1, %v8089_v16 }
  0x15   :  { %6878 = vmatpush3.msra.mxu1 %v217_v54  ;;  %6847 = vmatprep.subr.mxu0 %v7962_v25  ;;  %v259_v43 = vand.u32 4294901760, %v258_v32  ;;  %v272_v45 = vsub.f32 %v8072_v4, %v8095_v33  ;;  %v8117_v46 = vand.u32 4294901760, %v8099_v35  ;;  %v8121_v47 = vsub.f32 %v58_v9, %v8101_v38 }
  0x16   :  { %6879 = vmatprep.subr.mxu1 %v224_v60  ;;  %6848 = vmatpush3.msra.mxu0 %v7962_v25  ;;  %v266_v50 = vand.u32 4294901760, %v265_v40  ;;  %v279_v53 = vsub.f32 %v8087_v15, %v8107_v41  ;;  %v8127_v54 = vand.u32 4294901760, %v8111_v42  ;;  %vm831_vm4 = vcmask 261120  }
  0x17   :  { %6880 = vmatpush3.msra.mxu1 %v224_v60  ;;  %6849 = vmatprep.subr.mxu0 %v8022_v48  ;;  %v273_v58 = vand.u32 4294901760, %v272_v45  ;;  %v286_v59 = vsub.f32 %v8099_v35, %v8117_v46  ;;  %v8134_v60 = vand.u32 4294901760, %v8121_v47  ;;  %vm7841_vm5 = vmmov 0  }
  0x18   :  { %6881 = vmatprep.subr.mxu1 %v231_v2  ;;  %6850 = vmatpush3.msra.mxu0 %v8022_v48  ;;  %9351 = vst [vmem:[#allocation5_spill] sm:$0xff] %v8127_v54  ;;  %v280_v0 = vand.u32 4294901760, %v279_v53  ;;  %v293_v1 = vsub.f32 %v8111_v42, %v8127_v54  ;;  %vm5676_vm6 = vcmask 1043456   ;;  %vm6334_vm7 = vcmask 261124  }
  0x19   :  { %6882 = vmatpush3.msra.mxu1 %v231_v2  ;;  %6851 = vmatprep.subr.mxu0 %v8024_v49  ;;  %9352 = vst [vmem:[#allocation6_spill] sm:$0xff] %v8134_v60  ;;  %v287_v2 = vand.u32 4294901760, %v286_v59 }
  0x1a   :  { %6883 = vmatprep.subr.mxu1 %v238_v6  ;;  %6852 = vmatpush3.msra.mxu0 %v8024_v49  ;;  %v294_v9 = vand.u32 4294901760, %v293_v1 }
  0x1b   :  { %6884 = vmatpush3.msra.mxu1 %v238_v6  ;;  %6853 = vmatprep.subr.mxu0 %v8032_v52  ;;  %v300_v6 = vsub.f32 %v8121_v47, %v8134_v60 }
  0x1c   :  { %6885 = vmatprep.subr.mxu1 %v245_v17  ;;  %6854 = vmatpush3.msra.mxu0 %v8032_v52 }
  0x1d   :  { %6886 = vmatpush3.msra.mxu1 %v245_v17  ;;  %6855 = vmatprep.subr.mxu0 %v8044_v57  ;;  %v301_v10 = vand.u32 4294901760, %v300_v6  ;;  %v36_v17 = vlaneseq }
  0x1e   :  { %6887 = vmatprep.subr.mxu1 %v252_v39  ;;  %6856 = vmatpush3.msra.mxu0 %v8044_v57 }
  0x1f   :  { %6888 = vmatpush3.msra.mxu1 %v252_v39  ;;  %6857 = vmatprep.subr.mxu0 %v8059_v63  ;;  %v8149_v32 = vand.u32 127, %v36_v17 }
  0x20   :  { %6889 = vmatprep.subr.mxu1 %v259_v43  ;;  %6858 = vmatpush3.msra.mxu0 %v8059_v63 }
  0x21   :  { %6890 = vmatpush3.msra.mxu1 %v259_v43  ;;  %6859 = vmatprep.subr.mxu0 %v8074_v5  ;;  %v9344_v43 = vmov 0.0  }
  0x22   :  { %6891 = vmatprep.subr.mxu1 %v266_v50  ;;  %6860 = vmatpush3.msra.mxu0 %v8074_v5 }
  0x23   :  { %6892 = vmatpush3.msra.mxu1 %v266_v50  ;;  %6861 = vmatprep.subr.mxu0 %v8089_v16  ;;  %v9348_v50 = vmov 1.0  }
  0x24   :  { %6893 = vmatprep.subr.mxu1 %v273_v58  ;;  %6862 = vmatpush3.msra.mxu0 %v8089_v16 }
  0x25   :  { %6894 = vmatpush3.msra.mxu1 %v273_v58  ;;  %6863 = vmatprep.subr.mxu0 %v8101_v38 }
  0x26   :  { %6895 = vmatprep.subr.mxu1 %v280_v0  ;;  %6864 = vmatpush3.msra.mxu0 %v8101_v38 }
  0x27   :  { %6896 = vmatpush3.msra.mxu1 %v280_v0  ;;  %6909 = vmatprep.subr.mxu0 %v7942_v18 }
  0x28   :  { %6897 = vmatprep.subr.mxu1 %v287_v2 }
  0x29   :  { %6898 = vmatpush3.msra.mxu1 %v287_v2 }
  0x2a   :  { %6899 = vmatprep.subr.mxu1 %v294_v9 }
  0x2b   :  { %6900 = vmatpush3.msra.mxu1 %v294_v9 }
  0x2c   :  { %6901 = vmatprep.subr.mxu1 %v301_v10 }
  0x2d   :  { %6902 = vmatpush3.msra.mxu1 %v301_v10 }
  0x2e   :  { %6947 = vmatprep.subr.mxu1 %v7913_v7 }
  0x7d   :  { %v8151_v39 = vpop.permute.xlu0 %39  ;;  %v8153_v40 = vpop.permute.xlu1 %45 }
  0x7e   :  { %vm50_vm0 = vcmp.eq.s32.totalorder %v8151_v39, %v8149_v32  ;;  %vm52_vm1 = vcmp.eq.s32.totalorder %v8153_v40, %v8149_v32 }
  0x7f   :  { %v54_v45 = vsel %vm50_vm0, 1.0, %v9344_v43  ;;  %6903 = vmatprep.mubr.msk.f32.mxu1 %vm50_vm0, %v9348_v50  ;;  %v56_v53 = vsel %vm52_vm1, 1.0, %v9344_v43 }
  0x80   :  { %v155_v58 = vsub.f32 %v54_v45, %v54_v45  ;;  %v8171_v59 = vsub.f32 %v56_v53, %v56_v53 }
  0x81   :  { %v8173_v0 = vpop.permute.xlu0 %42 }
  0x82   :  { %v8175_v1 = vpop.permute.xlu1 %48  ;;  %vm51_vm2 = vcmp.eq.s32.totalorder %v8173_v0, %v8149_v32  ;;  %v156_v2 = vand.u32 4294901760, %v155_v58  ;;  %v9350_v53 = vand.u32 4294901760, %v8171_v59 }
  0x83   :  { %vm53_vm3 = vcmp.eq.s32.totalorder %v8175_v1, %v8149_v32  ;;  %v55_v6 = vsel %vm51_vm2, 1.0, %v9344_v43  ;;  %6904 = vmatmul.mubr.msk.f32.vlgmr.msra.gmra.mxu1 %vm51_vm2, %v9348_v50 }
  0x84   :  { %v57_v9 = vsel %vm53_vm3, 1.0, %v9344_v43  ;;  %v8193_v10 = vsub.f32 %v55_v6, %v55_v6  ;;  %6948 = vmatpush3.msra.mxu1 %v7913_v7  ;;  %6906 = vmatprep.mubr.msk.f32.mxu1 %vm52_vm1, %v9348_v50  ;;  %v157_v45 = vsub.f32 %v155_v58, %v156_v2 }
  0x85   :  { %v8196_v17 = vsub.f32 %v57_v9, %v57_v9  ;;  %6949 = vmatprep.subr.mxu1 %v7915_v8 }
  0x86   :  { %6950 = vmatpush3.msra.mxu1 %v7915_v8  ;;  %v158_v60 = vand.u32 4294901760, %v157_v45  ;;  %v165_v6 = vand.u32 4294901760, %v8193_v10  ;;  %v175_v45 = vsub.f32 %v8171_v59, %v9350_v53 }
  0x87   :  { %v183_v43 = vand.u32 4294901760, %v8196_v17  ;;  %6951 = vmatprep.subr.mxu1 %v7926_v12  ;;  %6907 = vmatmul.mubr.msk.f32.gmra.mxu1 %vm53_vm3, %v9348_v50 }
  0x88   :  { %6952 = vmatpush3.msra.mxu1 %v7926_v12  ;;  %6865 = vmatprep.mubr.f32.mxu0 %v158_v60  ;;  %v166_v9 = vsub.f32 %v8193_v10, %v165_v6  ;;  %v176_v60 = vand.u32 4294901760, %v175_v45 }
  0x89   :  { %6953 = vmatprep.subr.mxu1 %v7928_v13  ;;  %6979 = vmatprep.mubr.f32.mxu1 %v156_v2  ;;  %v184_v54 = vsub.f32 %v8196_v17, %v183_v43 }
  0x8a   :  { %6954 = vmatpush3.msra.mxu1 %v7928_v13  ;;  %v167_v50 = vand.u32 4294901760, %v166_v9 }
  0x8b   :  { %6955 = vmatprep.subr.mxu1 %v7930_v14  ;;  %v185_v53 = vand.u32 4294901760, %v184_v54 }
  0x8c   :  { %6956 = vmatpush3.msra.mxu1 %v7930_v14  ;;  %6866 = vmatmul.mubr.f32.vlgmr.msra.gmra.mxu0 %v167_v50 }
  0x8d   :  { %6910 = vmatpush3.msra.mxu0 %v7942_v18  ;;  %6957 = vmatprep.subr.mxu1 %v7948_v20  ;;  %v9353_v18 = vand.u32 4294901760, %v8171_v59 }
  0x8e   :  { %6911 = vmatprep.subr.mxu0 %v7945_v19  ;;  %6958 = vmatpush3.msra.mxu1 %v7948_v20 }
  0x8f   :  { %6912 = vmatpush3.msra.mxu0 %v7945_v19  ;;  %6959 = vmatprep.subr.mxu1 %v7950_v21  ;;  %v822_v19 = vld [vmem:[%s9334_s2 + $0x10] sm:$0xff] }
  0x90   :  { %6868 = vmatprep.mubr.f32.mxu0 %v176_v60  ;;  %6913 = vmatprep.subr.mxu0 %v7953_v22 }
  0x91   :  { %6960 = vmatpush3.msra.mxu1 %v7950_v21  ;;  %6869 = vmatmul.mubr.f32.gmra.mxu0 %v185_v53 }
  0x92   :  { %6914 = vmatpush3.msra.mxu0 %v7953_v22  ;;  %6961 = vmatprep.subr.mxu1 %v7962_v25  ;;  %v821_v22 = vld [vmem:[%s9334_s2 + $0x8] sm:$0xff] }
  0x93   :  { %6915 = vmatprep.subr.mxu0 %v7956_v23  ;;  %6941 = vmatprep.mubr.f32.mxu0 %v155_v58 }
  0x94   :  { %6962 = vmatpush3.msra.mxu1 %v7962_v25  ;;  %6916 = vmatpush3.msra.mxu0 %v7956_v23 }
  0x95   :  { %6963 = vmatprep.subr.mxu1 %v8022_v48  ;;  %6917 = vmatprep.subr.mxu0 %v7959_v24 }
  0x96   :  { %6964 = vmatpush3.msra.mxu1 %v8022_v48  ;;  %6918 = vmatpush3.msra.mxu0 %v7959_v24 }
  0x97   :  { %6965 = vmatprep.subr.mxu1 %v8024_v49  ;;  %6919 = vmatprep.subr.mxu0 %v7971_v28 }
  0x98   :  { %6966 = vmatpush3.msra.mxu1 %v8024_v49  ;;  %6920 = vmatpush3.msra.mxu0 %v7971_v28 }
  0x99   :  { %6967 = vmatprep.subr.mxu1 %v8032_v52  ;;  %6921 = vmatprep.subr.mxu0 %v7981_v31 }
  0x9a   :  { %6968 = vmatpush3.msra.mxu1 %v8032_v52  ;;  %6922 = vmatpush3.msra.mxu0 %v7981_v31 }
  0x9b   :  { %6969 = vmatprep.subr.mxu1 %v8044_v57  ;;  %6923 = vmatprep.subr.mxu0 %v7998_v37 }
  0x9c   :  { %6970 = vmatpush3.msra.mxu1 %v8044_v57  ;;  %6924 = vmatpush3.msra.mxu0 %v7998_v37 }
  0x9d   :  { %6971 = vmatprep.subr.mxu1 %v8059_v63  ;;  %6925 = vmatprep.subr.mxu0 %v8038_v55 }
  0x9e   :  { %6972 = vmatpush3.msra.mxu1 %v8059_v63  ;;  %6926 = vmatpush3.msra.mxu0 %v8038_v55 }
  0x9f   :  { %6973 = vmatprep.subr.mxu1 %v8074_v5  ;;  %6927 = vmatprep.subr.mxu0 %v8042_v56 }
  0xa0   :  { %6974 = vmatpush3.msra.mxu1 %v8074_v5  ;;  %6928 = vmatpush3.msra.mxu0 %v8042_v56  ;;  %v6368_v56 = vld [vmem:[%s9337_s5] ss:$0 sm:$0xff] }
  0xa1   :  { %6975 = vmatprep.subr.mxu1 %v8089_v16  ;;  %6929 = vmatprep.subr.mxu0 %v8057_v62 }
  0xa2   :  { %6976 = vmatpush3.msra.mxu1 %v8089_v16  ;;  %6930 = vmatpush3.msra.mxu0 %v8057_v62 }
  0xa3   :  { %6977 = vmatprep.subr.mxu1 %v8101_v38  ;;  %6931 = vmatprep.subr.mxu0 %v8072_v4 }
  0xa4   :  { %6978 = vmatpush3.msra.mxu1 %v8101_v38  ;;  %6932 = vmatpush3.msra.mxu0 %v8072_v4 }
  0xa5   :  { %6980 = vmatmul.mubr.f32.vlgmr.msra.gmra.mxu1 %v165_v6  ;;  %7023 = vmatprep.subr.mxu1 %v7913_v7 }
  0xa6   :  { %6933 = vmatprep.subr.mxu0 %v8087_v15  ;;  %6982 = vmatprep.mubr.f32.mxu1 %v9353_v18 }
  0xa7   :  { %7024 = vmatpush3.msra.mxu1 %v7913_v7  ;;  %6934 = vmatpush3.msra.mxu0 %v8087_v15  ;;  %v9354_v7 = vmov 1.0  }
  0xa8   :  { %7025 = vmatprep.subr.mxu1 %v7915_v8  ;;  %6935 = vmatprep.subr.mxu0 %v8099_v35 }
  0xa9   :  { %7026 = vmatpush3.msra.mxu1 %v7915_v8  ;;  %6936 = vmatpush3.msra.mxu0 %v8099_v35  ;;  %v9355_v8 = vld [vmem:[#allocation5_spill] sm:$0xff] }
  0xaa   :  { %6983 = vmatmul.mubr.f32.gmra.mxu1 %v183_v43  ;;  %7027 = vmatprep.subr.mxu1 %v7926_v12 }
  0xab   :  { %6937 = vmatprep.subr.mxu0 %v8111_v42  ;;  %7028 = vmatpush3.msra.mxu1 %v7926_v12  ;;  %v9356_v12 = vld [vmem:[#allocation6_spill] sm:$0xff] }
  0xac   :  { %7055 = vmatprep.mubr.msk.f32.mxu1 %vm50_vm0, %v9354_v7  ;;  %6938 = vmatpush3.msra.mxu0 %v8111_v42 }
  0xad   :  { %7029 = vmatprep.subr.mxu1 %v7928_v13  ;;  %6939 = vmatprep.subr.mxu0 %v8121_v47 }
  0xae   :  { %7030 = vmatpush3.msra.mxu1 %v7928_v13  ;;  %6940 = vmatpush3.msra.mxu0 %v8121_v47  ;;  %v823_v13 = vld [vmem:[%s9334_s2 + $0x18] sm:$0xff] }
  0xaf   :  { %7031 = vmatprep.subr.mxu1 %v7930_v14  ;;  %6942 = vmatmul.mubr.f32.vlgmr.msra.gmra.mxu0 %v8193_v10 }
  0xb0   :  { %6985 = vmatprep.subr.mxu0 %v7965_v26  ;;  %7032 = vmatpush3.msra.mxu1 %v7930_v14  ;;  %v8387_v14 = vand.u32 4294901760, %v823_v13 }
  0xb1   :  { %6944 = vmatprep.mubr.f32.mxu0 %v8171_v59  ;;  %6986 = vmatpush3.msra.mxu0 %v7965_v26  ;;  %v820_v26 = vld [vmem:[%s9334_s2] sm:$0xff] }
  0xb2   :  { %7033 = vmatprep.subr.mxu1 %v7948_v20  ;;  %6987 = vmatprep.subr.mxu0 %v7968_v27 }
  0xb3   :  { %7034 = vmatpush3.msra.mxu1 %v7948_v20  ;;  %6988 = vmatpush3.msra.mxu0 %v7968_v27  ;;  %v8393_v20 = vsub.f32 %v823_v13, %v8387_v14 }
  0xb4   :  { %7035 = vmatprep.subr.mxu1 %v7950_v21  ;;  %6945 = vmatmul.mubr.f32.gmra.mxu0 %v8196_v17 }
  0xb5   :  { %6989 = vmatprep.subr.mxu0 %v7974_v29  ;;  %7036 = vmatpush3.msra.mxu1 %v7950_v21  ;;  %v8395_v21 = vand.u32 4294901760, %v822_v19  ;;  %v8403_v23 = vand.u32 4294901760, %v8393_v20 }
  0xb6   :  { %6990 = vmatpush3.msra.mxu0 %v7974_v29  ;;  %7017 = vmatprep.mubr.msk.f32.mxu0 %vm50_vm0, %v9354_v7 }
  0xb7   :  { %7037 = vmatprep.subr.mxu1 %v7962_v25  ;;  %6991 = vmatprep.subr.mxu0 %v7977_v30  ;;  %v8406_v24 = vsub.f32 %v822_v19, %v8395_v21  ;;  %v981_v27 = vsub.f32 %v8393_v20, %v8403_v23 }
  0xb8   :  { %7038 = vmatpush3.msra.mxu1 %v7962_v25  ;;  %6992 = vmatpush3.msra.mxu0 %v7977_v30  ;;  %v8408_v25 = vand.u32 4294901760, %v821_v22  ;;  %v8423_v30 = vand.u32 4294901760, %v820_v26 }
  0xb9   :  { %7039 = vmatprep.subr.mxu1 %v8022_v48  ;;  %6993 = vmatprep.subr.mxu0 %v7988_v34  ;;  %v8418_v28 = vand.u32 4294901760, %v8406_v24  ;;  %v982_v31 = vand.u32 4294901760, %v981_v27 }
  0xba   :  { %7040 = vmatpush3.msra.mxu1 %v8022_v48  ;;  %6994 = vmatpush3.msra.mxu0 %v7988_v34  ;;  %v8421_v29 = vsub.f32 %v821_v22, %v8408_v25  ;;  %v8433_v37 = vsub.f32 %v820_v26, %v8423_v30 }
  0xbb   :  { %7041 = vmatprep.subr.mxu1 %v8024_v49  ;;  %6995 = vmatprep.subr.mxu0 %v7994_v36  ;;  %v988_v34 = vsub.f32 %v8406_v24, %v8418_v28 }
  0xbc   :  { %7042 = vmatpush3.msra.mxu1 %v8024_v49  ;;  %6996 = vmatpush3.msra.mxu0 %v7994_v36  ;;  %v8430_v36 = vand.u32 4294901760, %v8421_v29  ;;  %v8440_v49 = vand.u32 4294901760, %v8433_v37 }
  0xbd   :  { %7043 = vmatprep.subr.mxu1 %v8032_v52  ;;  %6997 = vmatprep.subr.mxu0 %v8013_v44 }
  0xbe   :  { %7044 = vmatpush3.msra.mxu1 %v8032_v52  ;;  %6998 = vmatpush3.msra.mxu0 %v8013_v44  ;;  %v989_v44 = vand.u32 4294901760, %v988_v34  ;;  %v995_v48 = vsub.f32 %v8421_v29, %v8430_v36  ;;  %v1002_v52 = vsub.f32 %v8433_v37, %v8440_v49 }
  0xbf   :  { %7045 = vmatprep.subr.mxu1 %v8044_v57  ;;  %6999 = vmatprep.subr.mxu0 %v8029_v51 }
  0xc0   :  { %7046 = vmatpush3.msra.mxu1 %v8044_v57  ;;  %7000 = vmatpush3.msra.mxu0 %v8029_v51  ;;  %v996_v51 = vand.u32 4294901760, %v995_v48  ;;  %v1003_v55 = vand.u32 4294901760, %v1002_v52 }
  0xc1   :  { %7047 = vmatprep.subr.mxu1 %v8059_v63  ;;  %7001 = vmatprep.subr.mxu0 %v8053_v61 }
  0xc2   :  { %7048 = vmatpush3.msra.mxu1 %v8059_v63  ;;  %7002 = vmatpush3.msra.mxu0 %v8053_v61 }
  0xc3   :  { %7049 = vmatprep.subr.mxu1 %v8074_v5  ;;  %7003 = vmatprep.subr.mxu0 %v8068_v3 }
  0xc4   :  { %7050 = vmatpush3.msra.mxu1 %v8074_v5  ;;  %7004 = vmatpush3.msra.mxu0 %v8068_v3 }
  0xc5   :  { %7051 = vmatprep.subr.mxu1 %v8089_v16  ;;  %7005 = vmatprep.subr.mxu0 %v8083_v11 }
  0xc6   :  { %7052 = vmatpush3.msra.mxu1 %v8089_v16  ;;  %7006 = vmatpush3.msra.mxu0 %v8083_v11 }
  0xc7   :  { %7053 = vmatprep.subr.mxu1 %v8101_v38  ;;  %7007 = vmatprep.subr.mxu0 %v8095_v33 }
  0xc8   :  { %7054 = vmatpush3.msra.mxu1 %v8101_v38  ;;  %7008 = vmatpush3.msra.mxu0 %v8095_v33 }
  0xc9   :  { %7056 = vmatmul.mubr.msk.f32.vlgmr.msra.gmra.mxu1 %vm51_vm2, %v9354_v7  ;;  %7009 = vmatprep.subr.mxu0 %v8107_v41 }
  0xca   :  { %7058 = vmatprep.mubr.msk.f32.mxu1 %vm52_vm1, %v9354_v7  ;;  %7010 = vmatpush3.msra.mxu0 %v8107_v41 }
  0xcb   :  { %7011 = vmatprep.subr.mxu0 %v8117_v46  ;;  %7075 = vmatprep.subr.mxu1 %v982_v31 }
  0xcc   :  { %7012 = vmatpush3.msra.mxu0 %v8117_v46  ;;  %7076 = vmatpush3.msra.mxu1 %v982_v31 }
  0xcd   :  { %7059 = vmatmul.mubr.msk.f32.gmra.mxu1 %vm53_vm3, %v9354_v7  ;;  %7013 = vmatprep.subr.mxu0 %v9355_v8 }
  0xce   :  { %7014 = vmatpush3.msra.mxu0 %v9355_v8  ;;  %7077 = vmatprep.subr.mxu1 %v989_v44 }
  0xcf   :  { %7015 = vmatprep.subr.mxu0 %v9356_v12  ;;  %7078 = vmatpush3.msra.mxu1 %v989_v44 }
  0xd0   :  { %7016 = vmatpush3.msra.mxu0 %v9356_v12  ;;  %7079 = vmatprep.subr.mxu1 %v996_v51 }
  0xd1   :  { %7018 = vmatmul.mubr.msk.f32.vlgmr.msra.gmra.mxu0 %vm51_vm2, %v9354_v7  ;;  %7061 = vmatprep.subr.mxu0 %v8387_v14 }
  0xd2   :  { %7020 = vmatprep.mubr.msk.f32.mxu0 %vm52_vm1, %v9354_v7  ;;  %7062 = vmatpush3.msra.mxu0 %v8387_v14 }
  0xd3   :  { %7063 = vmatprep.subr.mxu0 %v8395_v21  ;;  %7080 = vmatpush3.msra.mxu1 %v996_v51 }
  0xd4   :  { %7064 = vmatpush3.msra.mxu0 %v8395_v21  ;;  %7081 = vmatprep.subr.mxu1 %v1003_v55 }
  0xd5   :  { %7021 = vmatmul.mubr.msk.f32.gmra.mxu0 %vm53_vm3, %v9354_v7  ;;  %7065 = vmatprep.subr.mxu0 %v8408_v25 }
  0xd6   :  { %7066 = vmatpush3.msra.mxu0 %v8408_v25  ;;  %7082 = vmatpush3.msra.mxu1 %v1003_v55 }
  0xd7   :  { %7067 = vmatprep.subr.mxu0 %v8423_v30  ;;  %7103 = vmatprep.subr.mxu1 %v8387_v14 }
  0xd8   :  { %7068 = vmatpush3.msra.mxu0 %v8423_v30  ;;  %1963 = vrot.lane.b32.xlu0 %v6368_v56, %s7840_s13 }
  0xd9   :  { %7089 = vmatprep.subr.mxu0 %v8393_v20 }
 0x143   :  { %v6905_v57 = vpop.f32.mrf.mxu1 }
 0x145   :  { %v337_v61 = vpop.f32.mrf.mxu1 }
 0x147   :  { %v6908_v63 = vpop.f32.mrf.mxu1 }
 0x149   :  { %v347_v5 = vpop.f32.mrf.mxu1 }
 0x14c   :  { %v6867_v62 = vpop.f32.mrf.mxu0 }
 0x14d   :  { %v343_v41 = vadd.f32 %v6905_v57, %v6867_v62 }
 0x14e   :  { %v160_v3 = vpop.f32.mrf.mxu0 }
 0x14f   :  { %v338_v47 = vadd.f32 %v337_v61, %v160_v3 }
 0x151   :  { %v6870_v4 = vpop.f32.mrf.mxu0 }
 0x152   :  { %v353_v39 = vadd.f32 %v6908_v63, %v6870_v4 }
 0x153   :  { %v178_v15 = vpop.f32.mrf.mxu0 }
 0x154   :  { %v348_v50 = vadd.f32 %v347_v5, %v178_v15 }
 0x165   :  { %v6981_v11 = vpop.f32.mrf.mxu1 }
 0x167   :  { %v561_v16 = vpop.f32.mrf.mxu1 }
 0x16a   :  { %v6984_v35 = vpop.f32.mrf.mxu1 }
 0x16c   :  { %v575_v42 = vpop.f32.mrf.mxu1 }
 0x16f   :  { %v6943_v33 = vpop.f32.mrf.mxu0 }
 0x170   :  { %v462_v54 = vadd.f32 %v6943_v33, %v343_v41 }
 0x171   :  { %v455_v38 = vpop.f32.mrf.mxu0 }
 0x172   :  { %v456_v40 = vadd.f32 %v455_v38, %v338_v47  ;;  %v569_v59 = vadd.f32 %v6981_v11, %v462_v54  ;;  %v1460_v47 = vld [vmem:[%s9335_s3 + $0x10] sm:$0xff] }
 0x174   :  { %v6946_v46 = vpop.f32.mrf.mxu0  ;;  %v562_v17 = vadd.f32 %v561_v16, %v456_v40  ;;  %v1461_v16 = vld [vmem:[%s9335_s3 + $0x18] sm:$0xff]  ;;  %v8504_v40 = vand.u32 4294901760, %v1460_v47 }
 0x175   :  { %v474_v58 = vadd.f32 %v6946_v46, %v353_v39 }
 0x176   :  { %v467_v43 = vpop.f32.mrf.mxu0 }
 0x177   :  { %v468_v2 = vadd.f32 %v467_v43, %v348_v50  ;;  %v583_v45 = vadd.f32 %v6984_v35, %v474_v58  ;;  %v1458_v43 = vld [vmem:[%s9335_s3] sm:$0xff]  ;;  %v8520_v50 = vsub.f32 %v1460_v47, %v8504_v40 }
 0x178   :  { %v8522_v58 = vand.u32 4294901760, %v1458_v43 }
 0x179   :  { %v576_v13 = vadd.f32 %v575_v42, %v468_v2  ;;  %v8487_v42 = vand.u32 4294901760, %v1461_v16 }
 0x17b   :  { %v8502_v39 = vsub.f32 %v1461_v16, %v8487_v42 }
 0x189   :  { %v7057_v32 = vpop.f32.mrf.mxu1 }
 0x18b   :  { %v801_v0 = vpop.f32.mrf.mxu1 }
 0x18d   :  { %v7060_v60 = vpop.f32.mrf.mxu1 }
 0x18f   :  { %v811_v34 = vpop.f32.mrf.mxu1 }
 0x191   :  { %v7019_v1 = vpop.f32.mrf.mxu0 }
 0x192   :  { %v706_v10 = vadd.f32 %v7019_v1, %v569_v59  ;;  %v8537_v59 = vand.u32 4294901760, %v8520_v50 }
 0x193   :  { %v700_v53 = vpop.f32.mrf.mxu0 }
 0x194   :  { %v807_v6 = vadd.f32 %v7057_v32, %v706_v10  ;;  %v701_v9 = vadd.f32 %v700_v53, %v562_v17  ;;  %v1459_v32 = vld [vmem:[%s9335_s3 + $0x8] sm:$0xff]  ;;  %v1580_v1 = vsub.f32 %v8520_v50, %v8537_v59 }
 0x195   :  { %v7022_v18 = vpop.f32.mrf.mxu0 }
 0x196   :  { %v836_v7 = vsel %vm831_vm4, %v807_v6, 0  ;;  %v802_v8 = vadd.f32 %v801_v0, %v701_v9  ;;  %v716_v12 = vadd.f32 %v7022_v18, %v583_v45  ;;  %v6366_v45 = vld [vmem:[%s9336_s4] ss:$0 sm:$0xff]  ;;  %s7842_s4 = smov 96  }
 0x197   :  { %v8451_v19 = vand.u32 4294901760, %v836_v7  ;;  %v710_v22 = vpop.f32.mrf.mxu0 }
 0x198   :  { %v833_v26 = vsel %vm831_vm4, %v802_v8, 0  ;;  %v817_v27 = vadd.f32 %v7060_v60, %v716_v12  ;;  %v711_v31 = vadd.f32 %v710_v22, %v576_v13 }
 0x199   :  { %v8455_v44 = vsub.f32 %v836_v7, %v8451_v19  ;;  %v8457_v48 = vand.u32 4294901760, %v833_v26 }
 0x19a   :  { %v842_v51 = vsel %vm831_vm4, %v817_v27, 0  ;;  %v812_v52 = vadd.f32 %v811_v34, %v711_v31 }
 0x19b   :  { %v925_v55 = vand.u32 4294901760, %v8455_v44  ;;  %v914_v56 = vsub.f32 %v833_v26, %v8457_v48  ;;  %v8462_v57 = vand.u32 4294901760, %v842_v51  ;;  %7083 = vmatprep.mubr.f32.mxu1 %v8457_v48 }
 0x19c   :  { %v839_v61 = vsel %vm831_vm4, %v812_v52, 0  ;;  %7084 = vmatmul.mubr.f32.vlgmr.msra.gmra.mxu1 %v8451_v19 }
 0x19d   :  { %v8468_v62 = vsub.f32 %v842_v51, %v8462_v57  ;;  %v8470_v63 = vand.u32 4294901760, %v839_v61  ;;  %7104 = vmatpush3.msra.mxu1 %v8387_v14  ;;  %v915_v3 = vand.u32 4294901760, %v914_v56  ;;  %v926_v4 = vsub.f32 %v8455_v44, %v925_v55 }
 0x19e   :  { %7105 = vmatprep.subr.mxu1 %v8395_v21 }
 0x19f   :  { %v934_v5 = vsub.f32 %v839_v61, %v8470_v63  ;;  %7086 = vmatprep.mubr.f32.mxu1 %v8470_v63  ;;  %7106 = vmatpush3.msra.mxu1 %v8395_v21  ;;  %v916_v11 = vsub.f32 %v914_v56, %v915_v3  ;;  %v945_v15 = vand.u32 4294901760, %v8468_v62  ;;  %v927_v38 = vand.u32 4294901760, %v926_v4 }
 0x1a0   :  { %7087 = vmatmul.mubr.f32.gmra.mxu1 %v8462_v57  ;;  %7107 = vmatprep.subr.mxu1 %v8408_v25 }
 0x1a1   :  { %7108 = vmatpush3.msra.mxu1 %v8408_v25  ;;  %7111 = vmatprep.mubr.f32.mxu1 %v915_v3  ;;  %v917_v33 = vand.u32 4294901760, %v916_v11  ;;  %v935_v35 = vand.u32 4294901760, %v934_v5  ;;  %v946_v46 = vsub.f32 %v8468_v62, %v945_v15 }
 0x1a2   :  { %7109 = vmatprep.subr.mxu1 %v8423_v30 }
 0x1a3   :  { %7069 = vmatprep.mubr.f32.mxu0 %v917_v33  ;;  %7110 = vmatpush3.msra.mxu1 %v8423_v30  ;;  %v936_v41 = vsub.f32 %v934_v5, %v935_v35 }
 0x1a4   :  { %7070 = vmatmul.mubr.f32.vlgmr.msra.gmra.mxu0 %v927_v38  ;;  %7112 = vmatmul.mubr.f32.vlgmr.msra.gmra.mxu1 %v925_v55 }
 0x1a5   :  { %7090 = vmatpush3.msra.mxu0 %v8393_v20  ;;  %7131 = vmatprep.subr.mxu1 %v8387_v14  ;;  %v937_v54 = vand.u32 4294901760, %v936_v41  ;;  %v947_v20 = vand.u32 4294901760, %v946_v46 }
 0x1a6   :  { %7091 = vmatprep.subr.mxu0 %v8406_v24  ;;  %7114 = vmatprep.mubr.f32.mxu1 %v935_v35 }
 0x1a7   :  { %7132 = vmatpush3.msra.mxu1 %v8387_v14  ;;  %7092 = vmatpush3.msra.mxu0 %v8406_v24  ;;  %v8512_v14 = vand.u32 4294901760, %v1459_v32  ;;  %v8517_v24 = vand.u32 4294901760, %v8502_v39 }
 0x1a8   :  { %7133 = vmatprep.subr.mxu1 %v8395_v21  ;;  %7072 = vmatprep.mubr.f32.mxu0 %v937_v54 }
 0x1a9   :  { %7093 = vmatprep.subr.mxu0 %v8421_v29  ;;  %7134 = vmatpush3.msra.mxu1 %v8395_v21  ;;  %v8528_v21 = vsub.f32 %v1459_v32, %v8512_v14 }
 0x1aa   :  { %7073 = vmatmul.mubr.f32.gmra.mxu0 %v947_v20  ;;  %7115 = vmatmul.mubr.f32.gmra.mxu1 %v945_v15 }
 0x1ab   :  { %7094 = vmatpush3.msra.mxu0 %v8421_v29  ;;  %7135 = vmatprep.subr.mxu1 %v8408_v25  ;;  %v1573_v29 = vsub.f32 %v8502_v39, %v8517_v24 }
 0x1ac   :  { %7095 = vmatprep.subr.mxu0 %v8433_v37  ;;  %7097 = vmatprep.mubr.f32.mxu0 %v914_v56 }
 0x1ad   :  { %7136 = vmatpush3.msra.mxu1 %v8408_v25  ;;  %7139 = vmatprep.mubr.f32.mxu1 %v8457_v48  ;;  %v8540_v25 = vsub.f32 %v1458_v43, %v8522_v58  ;;  %v8552_v0 = vand.u32 4294901760, %v1573_v29 }
 0x1ae   :  { %7096 = vmatpush3.msra.mxu0 %v8433_v37  ;;  %7137 = vmatprep.subr.mxu1 %v8423_v30  ;;  %v8546_v37 = vand.u32 4294901760, %v8528_v21 }
 0x1af   :  { %7117 = vmatprep.subr.mxu0 %v8403_v23  ;;  %7138 = vmatpush3.msra.mxu1 %v8423_v30  ;;  %v9357_v30 = vmov 0.0   ;;  %v8557_v2 = vand.u32 4294901760, %v8540_v25 }
 0x1b0   :  { %7098 = vmatmul.mubr.f32.vlgmr.msra.gmra.mxu0 %v8455_v44  ;;  %7140 = vmatmul.mubr.f32.vlgmr.msra.gmra.mxu1 %v8451_v19 }
 0x1b1   :  { %7118 = vmatpush3.msra.mxu0 %v8403_v23  ;;  %7100 = vmatprep.mubr.f32.mxu0 %v934_v5  ;;  %v1587_v23 = vsub.f32 %v8528_v21, %v8546_v37  ;;  %v1594_v10 = vsub.f32 %v8540_v25, %v8557_v2 }
 0x1b2   :  { %7119 = vmatprep.subr.mxu0 %v8418_v28  ;;  %7142 = vmatprep.mubr.f32.mxu1 %v8470_v63 }
 0x1b3   :  { %7120 = vmatpush3.msra.mxu0 %v8418_v28  ;;  %7156 = vmatprep.subr.mxu1 %v9357_v30  ;;  %v8569_v28 = vand.u32 4294901760, %v1580_v1 }
 0x1b4   :  { %7121 = vmatprep.subr.mxu0 %v8430_v36  ;;  %7101 = vmatmul.mubr.f32.gmra.mxu0 %v8468_v62 }
 0x1b5   :  { %7122 = vmatpush3.msra.mxu0 %v8430_v36  ;;  %7143 = vmatmul.mubr.f32.gmra.mxu1 %v8462_v57  ;;  %v8577_v36 = vand.u32 4294901760, %v1587_v23 }
 0x1b6   :  { %7123 = vmatprep.subr.mxu0 %v8440_v49  ;;  %7125 = vmatprep.mubr.f32.mxu0 %v8457_v48 }
 0x1b7   :  { %7124 = vmatpush3.msra.mxu0 %v8440_v49  ;;  %7157 = vmatpush3.msra.mxu1 %v8552_v0  ;;  %v8583_v49 = vand.u32 4294901760, %v1594_v10 }
 0x1b8   :  { %7145 = vmatprep.subr.mxu0 %v9357_v30  ;;  %7126 = vmatmul.mubr.f32.vlgmr.msra.gmra.mxu0 %v8451_v19 }
 0x1b9   :  { %7146 = vmatpush3.msra.mxu0 %v8487_v42  ;;  %7128 = vmatprep.mubr.f32.mxu0 %v8470_v63 }
 0x1ba   :  { %7147 = vmatprep.subr.mxu0 %v9357_v30  ;;  %7158 = vmatprep.subr.mxu1 %v9357_v30 }
 0x1bb   :  { %7148 = vmatpush3.msra.mxu0 %v8504_v40  ;;  %7159 = vmatpush3.msra.mxu1 %v8569_v28 }
 0x1bc   :  { %7149 = vmatprep.subr.mxu0 %v9357_v30  ;;  %7160 = vmatprep.subr.mxu1 %v9357_v30 }
 0x1bd   :  { %7129 = vmatmul.mubr.f32.gmra.mxu0 %v8462_v57  ;;  %7161 = vmatpush3.msra.mxu1 %v8577_v36 }
 0x1be   :  { %7150 = vmatpush3.msra.mxu0 %v8512_v14  ;;  %7162 = vmatprep.subr.mxu1 %v9357_v30 }
 0x1bf   :  { %7151 = vmatprep.subr.mxu0 %v9357_v30  ;;  %7163 = vmatpush3.msra.mxu1 %v8583_v49 }
 0x1c0   :  { %7152 = vmatpush3.msra.mxu0 %v8522_v58  ;;  %7153 = vmatprep.mubr.msk.f32.mxu0 %vm7841_vm5, %v9357_v30 }
 0x1c1   :  { %7164 = vmatprep.mubr.msk.f32.mxu1 %vm7841_vm5, %v9357_v30  ;;  %7167 = vmatprep.subr.mxu0 %v9357_v30 }
 0x1c2   :  { %7178 = vmatprep.subr.mxu1 %v9357_v30  ;;  %7154 = vmatmul.mubr.f32.vlgmr.msra.gmra.mxu0 %v9357_v30 }
 0x1c3   :  { %7165 = vmatmul.mubr.f32.vlgmr.msra.gmra.mxu1 %v9357_v30  ;;  %7168 = vmatpush3.msra.mxu0 %v8502_v39 }
 0x1c4   :  { %7179 = vmatpush3.msra.mxu1 %v8487_v42  ;;  %7169 = vmatprep.subr.mxu0 %v9357_v30 }
 0x1c5   :  { %7180 = vmatprep.subr.mxu1 %v9357_v30  ;;  %7170 = vmatpush3.msra.mxu0 %v8520_v50 }
 0x1c6   :  { %7181 = vmatpush3.msra.mxu1 %v8504_v40  ;;  %7171 = vmatprep.subr.mxu0 %v9357_v30 }
 0x1c7   :  { %7182 = vmatprep.subr.mxu1 %v9357_v30  ;;  %7172 = vmatpush3.msra.mxu0 %v8528_v21 }
 0x1c8   :  { %7183 = vmatpush3.msra.mxu1 %v8512_v14  ;;  %7173 = vmatprep.subr.mxu0 %v9357_v30 }
 0x1c9   :  { %7184 = vmatprep.subr.mxu1 %v9357_v30  ;;  %7174 = vmatpush3.msra.mxu0 %v8540_v25 }
 0x1ca   :  { %7175 = vmatprep.mubr.msk.f32.mxu0 %vm7841_vm5, %v9357_v30  ;;  %7185 = vmatpush3.msra.mxu1 %v8522_v58 }
 0x1cb   :  { %7176 = vmatmul.mubr.f32.vlgmr.msra.gmra.mxu0 %v9357_v30  ;;  %7186 = vmatprep.mubr.msk.f32.mxu1 %vm7841_vm5, %v9357_v30 }
 0x1cc   :  { %7189 = vmatprep.subr.mxu0 %v9357_v30  ;;  %7200 = vmatprep.subr.mxu1 %v9357_v30 }
 0x1cd   :  { %7187 = vmatmul.mubr.f32.vlgmr.msra.gmra.mxu1 %v9357_v30  ;;  %7190 = vmatpush3.msra.mxu0 %v8517_v24 }
 0x1ce   :  { %7201 = vmatpush3.msra.mxu1 %v8487_v42  ;;  %7191 = vmatprep.subr.mxu0 %v9357_v30 }
 0x1cf   :  { %7202 = vmatprep.subr.mxu1 %v9357_v30  ;;  %7192 = vmatpush3.msra.mxu0 %v8537_v59 }
 0x1d0   :  { %7203 = vmatpush3.msra.mxu1 %v8504_v40  ;;  %7193 = vmatprep.subr.mxu0 %v9357_v30 }
 0x1d1   :  { %7204 = vmatprep.subr.mxu1 %v9357_v30  ;;  %7194 = vmatpush3.msra.mxu0 %v8546_v37 }
 0x1d2   :  { %7205 = vmatpush3.msra.mxu1 %v8512_v14  ;;  %7195 = vmatprep.subr.mxu0 %v9357_v30 }
 0x1d3   :  { %7206 = vmatprep.subr.mxu1 %v9357_v30  ;;  %7196 = vmatpush3.msra.mxu0 %v8557_v2 }
 0x1d4   :  { %7197 = vmatprep.mubr.msk.f32.mxu0 %vm7841_vm5, %v9357_v30  ;;  %7207 = vmatpush3.msra.mxu1 %v8522_v58 }
 0x1d5   :  { %7208 = vmatprep.mubr.msk.f32.mxu1 %vm7841_vm5, %v9357_v30  ;;  %7198 = vmatmul.mubr.f32.vlgmr.msra.gmra.mxu0 %v9357_v30 }
 0x1d6   :  { %7209 = vmatmul.mubr.f32.vlgmr.msra.gmra.mxu1 %v9357_v30  ;;  %7222 = vmatprep.subr.mxu1 %v9357_v30 }
 0x1d7   :  { %7223 = vmatpush3.msra.mxu1 %v8552_v0  ;;  %7211 = vmatprep.subr.mxu0 %v9357_v30 }
 0x1d8   :  { %7224 = vmatprep.subr.mxu1 %v9357_v30  ;;  %7230 = vmatprep.mubr.msk.f32.mxu1 %vm7841_vm5, %v9357_v30 }
 0x1d9   :  { %7225 = vmatpush3.msra.mxu1 %v8569_v28  ;;  %7212 = vmatpush3.msra.mxu0 %v8487_v42 }
 0x1da   :  { %7226 = vmatprep.subr.mxu1 %v9357_v30  ;;  %7213 = vmatprep.subr.mxu0 %v9357_v30 }
 0x1db   :  { %7227 = vmatpush3.msra.mxu1 %v8577_v36  ;;  %7214 = vmatpush3.msra.mxu0 %v8504_v40 }
 0x1dc   :  { %7228 = vmatprep.subr.mxu1 %v9357_v30  ;;  %7215 = vmatprep.subr.mxu0 %v9357_v30 }
 0x1dd   :  { %7229 = vmatpush3.msra.mxu1 %v8583_v49  ;;  %7216 = vmatpush3.msra.mxu0 %v8512_v14 }
 0x1de   :  { %7244 = vmatprep.subr.mxu1 %v9357_v30  ;;  %7217 = vmatprep.subr.mxu0 %v9357_v30 }
 0x1df   :  { %7218 = vmatpush3.msra.mxu0 %v8522_v58  ;;  %7219 = vmatprep.mubr.msk.f32.mxu0 %vm7841_vm5, %v9357_v30 }
 0x1e0   :  { %7233 = vmatprep.subr.mxu0 %v9357_v30 }
 0x25c   :  { %v7085_v17 = vpop.f32.mrf.mxu1 }
 0x25e   :  { %v1040_v53 = vpop.f32.mrf.mxu1 }
 0x260   :  { %v7088_v6 = vpop.f32.mrf.mxu1 }
 0x262   :  { %v1052_v9 = vpop.f32.mrf.mxu1 }
 0x264   :  { %v7071_v60 = vpop.f32.mrf.mxu0  ;;  %v7113_v7 = vpop.f32.mrf.mxu1 }
 0x265   :  { %v930_v18 = vadd.f32 %v7071_v60, %v6366_v45 }
 0x266   :  { %v919_v8 = vpop.f32.mrf.mxu0  ;;  %v1236_v19 = vpop.f32.mrf.mxu1 }
 0x267   :  { %v920_v12 = vadd.f32 %v6366_v45, %v919_v8  ;;  %v1047_v13 = vadd.f32 %v7085_v17, %v930_v18 }
 0x269   :  { %v1041_v22 = vadd.f32 %v1040_v53, %v920_v12 }
 0x26a   :  { %v7074_v26 = vpop.f32.mrf.mxu0  ;;  %v7116_v34 = vpop.f32.mrf.mxu1 }
 0x26b   :  { %v950_v27 = vadd.f32 %v7074_v26, %v6366_v45 }
 0x26c   :  { %v939_v31 = vpop.f32.mrf.mxu0  ;;  %v1252_v55 = vpop.f32.mrf.mxu1 }
 0x26d   :  { %v940_v44 = vadd.f32 %v6366_v45, %v939_v31  ;;  %v1059_v48 = vadd.f32 %v7088_v6, %v950_v27 }
 0x26f   :  { %v1053_v51 = vadd.f32 %v1052_v9, %v940_v44  ;;  %v8677_v44 = vpop.permute.xlu0 %1963 }
 0x270   :  { %v7099_v52 = vpop.f32.mrf.mxu0  ;;  %v7141_v3 = vpop.f32.mrf.mxu1 }
 0x271   :  { %v1146_v56 = vadd.f32 %v7099_v52, %v1047_v13 }
 0x272   :  { %v1138_v57 = vpop.f32.mrf.mxu0  ;;  %v1436_v35 = vpop.f32.mrf.mxu1 }
 0x273   :  { %v1139_v61 = vadd.f32 %v1138_v57, %v1041_v22  ;;  %v1245_v62 = vadd.f32 %v7113_v7, %v1146_v56 }
 0x274   :  { %v7102_v63 = vpop.f32.mrf.mxu0 }
 0x275   :  { %v1160_v4 = vadd.f32 %v7102_v63, %v1059_v48  ;;  %v1237_v5 = vadd.f32 %v1236_v19, %v1139_v61  ;;  %v7144_v32 = vpop.f32.mrf.mxu1 }
 0x276   :  { %v1152_v11 = vpop.f32.mrf.mxu0 }
 0x277   :  { %v1153_v15 = vadd.f32 %v1152_v11, %v1053_v51  ;;  %v1261_v16 = vadd.f32 %v7116_v34, %v1160_v4  ;;  %v1448_v17 = vpop.f32.mrf.mxu1 }
 0x278   :  { %v7127_v33 = vpop.f32.mrf.mxu0 }
 0x279   :  { %v1350_v38 = vadd.f32 %v7127_v33, %v1245_v62  ;;  %v1253_v41 = vadd.f32 %v1252_v55, %v1153_v15 }
 0x27a   :  { %v1343_v46 = vpop.f32.mrf.mxu0 }
 0x27b   :  { %v8669_v47 = vadd.f32 %v7141_v3, %v1350_v38  ;;  %v1344_v54 = vadd.f32 %v1343_v46, %v1237_v5 }
 0x27d   :  { %v8671_v20 = vadd.f32 %v1436_v35, %v1344_v54  ;;  %v7130_v43 = vpop.f32.mrf.mxu0 }
 0x27e   :  { %v1362_v29 = vadd.f32 %v7130_v43, %v1261_v16 }
 0x27f   :  { %v1355_v1 = vpop.f32.mrf.mxu0 }
 0x280   :  { %v8673_v23 = vadd.f32 %v7144_v32, %v1362_v29  ;;  %v1356_v10 = vadd.f32 %v1355_v1, %v1253_v41 }
 0x282   :  { %v8675_v53 = vadd.f32 %v1448_v17, %v1356_v10  ;;  %v1541_v6 = vpop.f32.mrf.mxu0 }
 0x283   :  { %v1632_v9 = vpop.f32.mrf.mxu1 }
 0x284   :  { %v7155_v45 = vpop.f32.mrf.mxu0  ;;  %v1633_v12 = vadd.f32 %v1632_v9, %v1541_v6 }
 0x285   :  { %v7166_v60 = vpop.f32.mrf.mxu1 }
 0x28b   :  { %v1712_v18 = vpop.f32.mrf.mxu0 }
 0x28c   :  { %v1713_v19 = vadd.f32 %v1712_v18, %v1633_v12 }
 0x28d   :  { %v1789_v7 = vpop.f32.mrf.mxu1  ;;  %v7177_v8 = vpop.f32.mrf.mxu0 }
 0x28e   :  { %v1790_v22 = vadd.f32 %v1789_v7, %v1713_v19 }
 0x28f   :  { %v7188_v13 = vpop.f32.mrf.mxu1 }
 0x295   :  { %v1872_v26 = vpop.f32.mrf.mxu0 }
 0x296   :  { %v1873_v27 = vadd.f32 %v1872_v26, %v1790_v22  ;;  %v1947_v31 = vpop.f32.mrf.mxu1 }
 0x297   :  { %v7199_v34 = vpop.f32.mrf.mxu0 }
 0x298   :  { %v1948_v48 = vadd.f32 %v1947_v31, %v1873_v27  ;;  %v7210_v51 = vpop.f32.mrf.mxu1 }
 0x29a   :  { %v1966_v52 = vadd.f32 %v8677_v44, %v1948_v48  ;;  %v1951_v55 = vadd.f32 %v1948_v48, %v8671_v20 }
 0x29c   :  { %1968 = vrot.lane.b32.xlu1 %v1966_v52, %s7840_s13  ;;  %v6367_v56 = vmul.f32 -1.442695, %v1951_v55 }
 0x29e   :  { %7767 = vpow2.f32 %v6367_v56 }
 0x2ab   :  { %v7768_v57 = vpop.eup %7767 }
 0x2ac   :  { %v1955_v61 = vadd.f32 1.0, %v7768_v57 }
 0x2ae   :  { %7769 = vrcp.f32 %v1955_v61 }
 0x2bb   :  { %v7770_v62 = vpop.eup %7769 }
 0x30e   :  { %v1969_v63 = vpop.permute.xlu1 %1968 }
 0x30f   :  { %v1971_v3 = vmul.f32 %v7770_v62, %v1969_v63 }
 0x311   :  { %1973 = vrot.lane.b32.xlu0 %v1971_v3, %s7840_s13 }
 0x383   :  { %v1974_v4 = vpop.permute.xlu0 %1973 }
 0x384   :  { %v1976_v5 = vadd.f32 %v1974_v4, %v8671_v20 }
 0x386   :  { %7771 = vtanh.f32 %v1976_v5 }
 0x393   :  { %v7772_v11 = vpop.eup %7771 }
 0x394   :  { %v1978_v15 = vsub.f32 0.0, %v7772_v11 }
 0x396   :  { %1980 = vrot.lane.b32.xlu1 %v1978_v15, %s7842_s4 }
 0x408   :  { %v1981_v16 = vpop.permute.xlu1 %1980 }
 0x409   :  { %v1983_v33 = vmul.f32 %v7770_v62, %v1981_v16 }
 0x40b   :  { %1985 = vrot.lane.b32.xlu0 %v1983_v33, %s7843_s22 }
 0x47d   :  { %v1986_v35 = vpop.permute.xlu0 %1985 }
 0x47e   :  { %v8686_v38 = vadd.f32 %v7772_v11, %v1986_v35 }
 0x480   :  { %1990 = vrot.lane.b32.xlu1 %v8686_v38, %s7840_s13 }
 0x4f2   :  { %v1991_v41 = vpop.permute.xlu1 %1990 }
 0x4f3   :  { %v1992_v46 = vsel %vm831_vm4, %v1991_v41, 0 }
 0x4f4   :  { %v2063_v54 = vand.u32 4294901760, %v1992_v46 }
 0x4f6   :  { %v2064_v32 = vsub.f32 %v1992_v46, %v2063_v54  ;;  %7231 = vmatmul.mubr.f32.vlgmr.msra.gmra.mxu1 %v2063_v54 }
 0x4f7   :  { %7245 = vmatpush3.msra.mxu1 %v8487_v42  ;;  %7252 = vmatprep.mubr.msk.f32.mxu1 %vm7841_vm5, %v9357_v30 }
 0x4f8   :  { %v2065_v43 = vand.u32 4294901760, %v2064_v32  ;;  %7246 = vmatprep.subr.mxu1 %v9357_v30 }
 0x4f9   :  { %7247 = vmatpush3.msra.mxu1 %v8504_v40 }
 0x4fa   :  { %v2066_v29 = vsub.f32 %v2064_v32, %v2065_v43  ;;  %7248 = vmatprep.subr.mxu1 %v9357_v30 }
 0x4fb   :  { %7249 = vmatpush3.msra.mxu1 %v8512_v14 }
 0x4fc   :  { %v2067_v1 = vand.u32 4294901760, %v2066_v29  ;;  %7250 = vmatprep.subr.mxu1 %v9357_v30 }
 0x4fd   :  { %7251 = vmatpush3.msra.mxu1 %v8522_v58 }
 0x4fe   :  { %7253 = vmatmul.mubr.f32.vlgmr.msra.gmra.mxu1 %v2065_v43  ;;  %7266 = vmatprep.subr.mxu1 %v9357_v30 }
 0x4ff   :  { %7220 = vmatmul.mubr.f32.vlgmr.msra.gmra.mxu0 %v2067_v1  ;;  %7267 = vmatpush3.msra.mxu1 %v8487_v42 }
 0x500   :  { %7234 = vmatpush3.msra.mxu0 %v8502_v39  ;;  %7268 = vmatprep.subr.mxu1 %v9357_v30 }
 0x501   :  { %7235 = vmatprep.subr.mxu0 %v9357_v30  ;;  %7269 = vmatpush3.msra.mxu1 %v8504_v40 }
 0x502   :  { %7236 = vmatpush3.msra.mxu0 %v8520_v50  ;;  %7270 = vmatprep.subr.mxu1 %v9357_v30 }
 0x503   :  { %7237 = vmatprep.subr.mxu0 %v9357_v30  ;;  %7271 = vmatpush3.msra.mxu1 %v8512_v14 }
 0x504   :  { %7238 = vmatpush3.msra.mxu0 %v8528_v21  ;;  %7272 = vmatprep.subr.mxu1 %v9357_v30 }
 0x505   :  { %7239 = vmatprep.subr.mxu0 %v9357_v30  ;;  %7241 = vmatprep.mubr.msk.f32.mxu0 %vm7841_vm5, %v9357_v30 }
 0x506   :  { %7240 = vmatpush3.msra.mxu0 %v8540_v25  ;;  %7273 = vmatpush3.msra.mxu1 %v8522_v58 }
 0x507   :  { %7274 = vmatprep.mubr.msk.f32.mxu1 %vm7841_vm5, %v9357_v30  ;;  %7242 = vmatmul.mubr.f32.vlgmr.msra.gmra.mxu0 %v2064_v32 }
 0x508   :  { %7255 = vmatprep.subr.mxu0 %v9357_v30  ;;  %7275 = vmatmul.mubr.f32.vlgmr.msra.gmra.mxu1 %v2063_v54 }
 0x509   :  { %7256 = vmatpush3.msra.mxu0 %v8517_v24  ;;  %7263 = vmatprep.mubr.msk.f32.mxu0 %vm7841_vm5, %v9357_v30 }
 0x50a   :  { %7257 = vmatprep.subr.mxu0 %v9357_v30  ;;  %7288 = vmatprep.subr.mxu1 %v9357_v30 }
 0x50b   :  { %7258 = vmatpush3.msra.mxu0 %v8537_v59  ;;  %7289 = vmatpush3.msra.mxu1 %v8552_v0 }
 0x50c   :  { %7259 = vmatprep.subr.mxu0 %v9357_v30  ;;  %7290 = vmatprep.subr.mxu1 %v9357_v30 }
 0x50d   :  { %7260 = vmatpush3.msra.mxu0 %v8546_v37  ;;  %7291 = vmatpush3.msra.mxu1 %v8569_v28 }
 0x50e   :  { %7261 = vmatprep.subr.mxu0 %v9357_v30  ;;  %7292 = vmatprep.subr.mxu1 %v9357_v30 }
 0x50f   :  { %7262 = vmatpush3.msra.mxu0 %v8557_v2  ;;  %7293 = vmatpush3.msra.mxu1 %v8577_v36 }
 0x510   :  { %7264 = vmatmul.mubr.f32.vlgmr.msra.gmra.mxu0 %v2063_v54  ;;  %7294 = vmatprep.subr.mxu1 %v9357_v30 }
 0x511   :  { %7295 = vmatpush3.msra.mxu1 %v8583_v49  ;;  %7277 = vmatprep.subr.mxu0 %v9357_v30 }
 0x512   :  { %7296 = vmatprep.mubr.msk.f32.mxu1 %vm7841_vm5, %v9357_v30  ;;  %7310 = vmatprep.subr.mxu1 %v9357_v30 }
 0x513   :  { %7278 = vmatpush3.msra.mxu0 %v8487_v42  ;;  %7285 = vmatprep.mubr.msk.f32.mxu0 %vm7841_vm5, %v9357_v30 }
 0x514   :  { %7279 = vmatprep.subr.mxu0 %v9357_v30 }
 0x515   :  { %7280 = vmatpush3.msra.mxu0 %v8504_v40 }
 0x516   :  { %7281 = vmatprep.subr.mxu0 %v9357_v30 }
 0x517   :  { %7282 = vmatpush3.msra.mxu0 %v8512_v14 }
 0x518   :  { %7283 = vmatprep.subr.mxu0 %v9357_v30 }
 0x519   :  { %7284 = vmatpush3.msra.mxu0 %v8522_v58 }
 0x51a   :  { %7299 = vmatprep.subr.mxu0 %v9357_v30 }
 0x5b6   :  { %v2160_v10 = vpop.f32.mrf.mxu1 }
 0x5b8   :  { %v7232_v17 = vpop.f32.mrf.mxu1 }
 0x5be   :  { %v2317_v6 = vpop.f32.mrf.mxu1 }
 0x5bf   :  { %v2069_v9 = vpop.f32.mrf.mxu0 }
 0x5c0   :  { %v7254_v45 = vpop.f32.mrf.mxu1  ;;  %v2161_v8 = vadd.f32 %v2160_v10, %v2069_v9 }
 0x5c1   :  { %v7221_v60 = vpop.f32.mrf.mxu0 }
 0x5c7   :  { %v2240_v18 = vpop.f32.mrf.mxu0 }
 0x5c8   :  { %v2475_v7 = vpop.f32.mrf.mxu1  ;;  %v2241_v19 = vadd.f32 %v2240_v18, %v2161_v8 }
 0x5c9   :  { %v7243_v12 = vpop.f32.mrf.mxu0 }
 0x5ca   :  { %v7276_v13 = vpop.f32.mrf.mxu1  ;;  %v2318_v22 = vadd.f32 %v2317_v6, %v2241_v19 }
 0x5d0   :  { %v2400_v26 = vpop.f32.mrf.mxu0 }
 0x5d1   :  { %v2401_v27 = vadd.f32 %v2400_v26, %v2318_v22 }
 0x5d2   :  { %v7265_v31 = vpop.f32.mrf.mxu0 }
 0x5d3   :  { %v2476_v34 = vadd.f32 %v2475_v7, %v2401_v27 }
 0x5d5   :  { %v2489_v48 = vadd.f32 %v2476_v34, %v8677_v44  ;;  %v2480_v52 = vrot.slane %v2476_v34, 4 }
 0x5d7   :  { %v2491_v51 = vrot.slane %v2489_v48, 4  ;;  %v2482_v55 = vadd.f32 %v2480_v52, %v8671_v20 }
 0x5d9   :  { %2492 = vrot.lane.b32.xlu0 %v2491_v51, %s7840_s13  ;;  %v6369_v56 = vmul.f32 -1.442695, %v2482_v55 }
 0x5db   :  { %7773 = vpow2.f32 %v6369_v56 }
 0x5e8   :  { %v7774_v57 = vpop.eup %7773 }
 0x5e9   :  { %v2486_v61 = vadd.f32 1.0, %v7774_v57 }
 0x5eb   :  { %7775 = vrcp.f32 %v2486_v61 }
 0x5f8   :  { %v7776_v62 = vpop.eup %7775 }
 0x64b   :  { %v2493_v63 = vpop.permute.xlu0 %2492 }
 0x64c   :  { %v2495_v3 = vmul.f32 %v7776_v62, %v2493_v63 }
 0x64e   :  { %2497 = vrot.lane.b32.xlu1 %v2495_v3, %s7840_s13 }
 0x6c0   :  { %v2498_v4 = vpop.permute.xlu1 %2497 }
 0x6c1   :  { %v2500_v5 = vadd.f32 %v2498_v4, %v8671_v20 }
 0x6c3   :  { %7777 = vtanh.f32 %v2500_v5 }
 0x6d0   :  { %v7778_v11 = vpop.eup %7777 }
 0x6d1   :  { %v2503_v15 = vrot.slane %v7778_v11, 4 }
 0x6d3   :  { %v2505_v16 = vsub.f32 %v8686_v38, %v2503_v15 }
 0x6d5   :  { %v2507_v33 = vrot.slane %v2505_v16, 4 }
 0x6d7   :  { %2508 = vrot.lane.b32.xlu0 %v2507_v33, %s7842_s4 }
 0x749   :  { %v2509_v35 = vpop.permute.xlu0 %2508 }
 0x74a   :  { %v2511_v41 = vmul.f32 %v7776_v62, %v2509_v35 }
 0x74c   :  { %2513 = vrot.lane.b32.xlu1 %v2511_v41, %s7843_s22 }
 0x7be   :  { %v2514_v46 = vpop.permute.xlu1 %2513 }
 0x7bf   :  { %v8759_v54 = vadd.f32 %v7778_v11, %v2514_v46 }
 0x7c1   :  { %v2518_v32 = vrot.slane %v8759_v54, 4 }
 0x7c3   :  { %2519 = vrot.lane.b32.xlu0 %v2518_v32, %s7840_s13 }
 0x835   :  { %v2520_v20 = vpop.permute.xlu0 %2519 }
 0x836   :  { %v2521_v43 = vsel %vm831_vm4, %v2520_v20, 0 }
 0x837   :  { %v2592_v29 = vand.u32 4294901760, %v2521_v43 }
 0x839   :  { %v2593_v1 = vsub.f32 %v2521_v43, %v2592_v29  ;;  %7297 = vmatmul.mubr.f32.vlgmr.msra.gmra.mxu1 %v2592_v29 }
 0x83a   :  { %7311 = vmatpush3.msra.mxu1 %v8487_v42  ;;  %7318 = vmatprep.mubr.msk.f32.mxu1 %vm7841_vm5, %v9357_v30 }
 0x83b   :  { %v2594_v10 = vand.u32 4294901760, %v2593_v1  ;;  %7312 = vmatprep.subr.mxu1 %v9357_v30 }
 0x83c   :  { %7313 = vmatpush3.msra.mxu1 %v8504_v40 }
 0x83d   :  { %v2595_v17 = vsub.f32 %v2593_v1, %v2594_v10  ;;  %7314 = vmatprep.subr.mxu1 %v9357_v30 }
 0x83e   :  { %7315 = vmatpush3.msra.mxu1 %v8512_v14 }
 0x83f   :  { %v2596_v6 = vand.u32 4294901760, %v2595_v17  ;;  %7316 = vmatprep.subr.mxu1 %v9357_v30 }
 0x840   :  { %7317 = vmatpush3.msra.mxu1 %v8522_v58 }
 0x841   :  { %7319 = vmatmul.mubr.f32.vlgmr.msra.gmra.mxu1 %v2594_v10  ;;  %7332 = vmatprep.subr.mxu1 %v9357_v30 }
 0x842   :  { %7286 = vmatmul.mubr.f32.vlgmr.msra.gmra.mxu0 %v2596_v6  ;;  %7333 = vmatpush3.msra.mxu1 %v8487_v42 }
 0x843   :  { %7300 = vmatpush3.msra.mxu0 %v8502_v39  ;;  %7334 = vmatprep.subr.mxu1 %v9357_v30 }
 0x844   :  { %7301 = vmatprep.subr.mxu0 %v9357_v30  ;;  %7335 = vmatpush3.msra.mxu1 %v8504_v40 }
 0x845   :  { %7302 = vmatpush3.msra.mxu0 %v8520_v50  ;;  %7336 = vmatprep.subr.mxu1 %v9357_v30 }
 0x846   :  { %7303 = vmatprep.subr.mxu0 %v9357_v30  ;;  %7337 = vmatpush3.msra.mxu1 %v8512_v14 }
 0x847   :  { %7304 = vmatpush3.msra.mxu0 %v8528_v21  ;;  %7338 = vmatprep.subr.mxu1 %v9357_v30 }
 0x848   :  { %7305 = vmatprep.subr.mxu0 %v9357_v30  ;;  %7307 = vmatprep.mubr.msk.f32.mxu0 %vm7841_vm5, %v9357_v30 }
 0x849   :  { %7306 = vmatpush3.msra.mxu0 %v8540_v25  ;;  %7339 = vmatpush3.msra.mxu1 %v8522_v58 }
 0x84a   :  { %7340 = vmatprep.mubr.msk.f32.mxu1 %vm7841_vm5, %v9357_v30  ;;  %7308 = vmatmul.mubr.f32.vlgmr.msra.gmra.mxu0 %v2593_v1 }
 0x84b   :  { %7321 = vmatprep.subr.mxu0 %v9357_v30  ;;  %7341 = vmatmul.mubr.f32.vlgmr.msra.gmra.mxu1 %v2592_v29 }
 0x84c   :  { %7322 = vmatpush3.msra.mxu0 %v8517_v24  ;;  %7329 = vmatprep.mubr.msk.f32.mxu0 %vm7841_vm5, %v9357_v30 }
 0x84d   :  { %7323 = vmatprep.subr.mxu0 %v9357_v30  ;;  %7354 = vmatprep.subr.mxu1 %v9357_v30 }
 0x84e   :  { %7324 = vmatpush3.msra.mxu0 %v8537_v59  ;;  %7355 = vmatpush3.msra.mxu1 %v8552_v0 }
 0x84f   :  { %7325 = vmatprep.subr.mxu0 %v9357_v30  ;;  %7356 = vmatprep.subr.mxu1 %v9357_v30 }
 0x850   :  { %7326 = vmatpush3.msra.mxu0 %v8546_v37  ;;  %7357 = vmatpush3.msra.mxu1 %v8569_v28 }
 0x851   :  { %7327 = vmatprep.subr.mxu0 %v9357_v30  ;;  %7358 = vmatprep.subr.mxu1 %v9357_v30 }
 0x852   :  { %7328 = vmatpush3.msra.mxu0 %v8557_v2  ;;  %7359 = vmatpush3.msra.mxu1 %v8577_v36 }
 0x853   :  { %7330 = vmatmul.mubr.f32.vlgmr.msra.gmra.mxu0 %v2592_v29  ;;  %7360 = vmatprep.subr.mxu1 %v9357_v30 }
 0x854   :  { %7361 = vmatpush3.msra.mxu1 %v8583_v49  ;;  %7343 = vmatprep.subr.mxu0 %v9357_v30 }
 0x855   :  { %7362 = vmatprep.mubr.msk.f32.mxu1 %vm7841_vm5, %v9357_v30  ;;  %7376 = vmatprep.subr.mxu1 %v9357_v30 }
 0x856   :  { %7344 = vmatpush3.msra.mxu0 %v8487_v42  ;;  %7351 = vmatprep.mubr.msk.f32.mxu0 %vm7841_vm5, %v9357_v30 }
 0x857   :  { %7345 = vmatprep.subr.mxu0 %v9357_v30 }
 0x858   :  { %7346 = vmatpush3.msra.mxu0 %v8504_v40 }
 0x859   :  { %7347 = vmatprep.subr.mxu0 %v9357_v30 }
 0x85a   :  { %7348 = vmatpush3.msra.mxu0 %v8512_v14 }
 0x85b   :  { %7349 = vmatprep.subr.mxu0 %v9357_v30 }
 0x85c   :  { %7350 = vmatpush3.msra.mxu0 %v8522_v58 }
 0x85d   :  { %7365 = vmatprep.subr.mxu0 %v9357_v30 }
 0x8f9   :  { %v2689_v9 = vpop.f32.mrf.mxu1 }
 0x8fb   :  { %v7298_v45 = vpop.f32.mrf.mxu1 }
 0x901   :  { %v2846_v60 = vpop.f32.mrf.mxu1 }
 0x902   :  { %v2598_v18 = vpop.f32.mrf.mxu0 }
 0x903   :  { %v7320_v7 = vpop.f32.mrf.mxu1  ;;  %v2690_v19 = vadd.f32 %v2689_v9, %v2598_v18 }
 0x904   :  { %v7287_v8 = vpop.f32.mrf.mxu0 }
 0x90a   :  { %v2769_v12 = vpop.f32.mrf.mxu0 }
 0x90b   :  { %v3004_v13 = vpop.f32.mrf.mxu1  ;;  %v2770_v27 = vadd.f32 %v2769_v12, %v2690_v19 }
 0x90c   :  { %v7309_v22 = vpop.f32.mrf.mxu0 }
 0x90d   :  { %v7342_v26 = vpop.f32.mrf.mxu1  ;;  %v2847_v31 = vadd.f32 %v2846_v60, %v2770_v27 }
 0x913   :  { %v2929_v34 = vpop.f32.mrf.mxu0 }
 0x914   :  { %v2930_v48 = vadd.f32 %v2929_v34, %v2847_v31 }
 0x915   :  { %v7331_v51 = vpop.f32.mrf.mxu0 }
 0x916   :  { %v3005_v52 = vadd.f32 %v3004_v13, %v2930_v48 }
 0x918   :  { %v3015_v55 = vadd.f32 %v3005_v52, %v8677_v44  ;;  %v3008_v56 = vadd.f32 %v3005_v52, %v8669_v47 }
 0x91a   :  { %3017 = vrot.lane.b32.xlu1 %v3015_v55, %s7840_s13  ;;  %v6370_v57 = vmul.f32 -1.442695, %v3008_v56 }
 0x91c   :  { %7779 = vpow2.f32 %v6370_v57 }
 0x929   :  { %v7780_v61 = vpop.eup %7779 }
 0x92a   :  { %v3012_v62 = vadd.f32 1.0, %v7780_v61 }
 0x92c   :  { %7781 = vrcp.f32 %v3012_v62 }
 0x939   :  { %v7782_v63 = vpop.eup %7781 }
 0x98c   :  { %v3018_v3 = vpop.permute.xlu1 %3017 }
 0x98d   :  { %v3020_v4 = vmul.f32 %v7782_v63, %v3018_v3 }
 0x98f   :  { %3022 = vrot.lane.b32.xlu0 %v3020_v4, %s7840_s13 }
 0xa01   :  { %v3023_v5 = vpop.permute.xlu0 %3022 }
 0xa02   :  { %v3025_v11 = vadd.f32 %v3023_v5, %v8669_v47 }
 0xa04   :  { %7783 = vtanh.f32 %v3025_v11 }
 0xa11   :  { %v7784_v15 = vpop.eup %7783 }
 0xa12   :  { %v3028_v16 = vrot.slane %v7784_v15, 4 }
 0xa14   :  { %v3030_v33 = vsub.f32 %v8759_v54, %v3028_v16 }
 0xa16   :  { %v3032_v35 = vrot.slane %v3030_v33, 4 }
 0xa18   :  { %3033 = vrot.lane.b32.xlu1 %v3032_v35, %s7842_s4 }
 0xa8a   :  { %v3034_v41 = vpop.permute.xlu1 %3033 }
 0xa8b   :  { %v3036_v46 = vmul.f32 %v7782_v63, %v3034_v41 }
 0xa8d   :  { %3038 = vrot.lane.b32.xlu0 %v3036_v46, %s7843_s22 }
 0xaff   :  { %v3039_v32 = vpop.permute.xlu0 %3038 }
 0xb00   :  { %v8832_v20 = vadd.f32 %v7784_v15, %v3039_v32 }
 0xb02   :  { %3043 = vrot.lane.b32.xlu1 %v8832_v20, %s7840_s13 }
 0xb74   :  { %v3044_v43 = vpop.permute.xlu1 %3043 }
 0xb75   :  { %v3045_v29 = vsel %vm831_vm4, %v3044_v43, 0 }
 0xb76   :  { %v3116_v1 = vand.u32 4294901760, %v3045_v29 }
 0xb78   :  { %v3117_v10 = vsub.f32 %v3045_v29, %v3116_v1  ;;  %7363 = vmatmul.mubr.f32.vlgmr.msra.gmra.mxu1 %v3116_v1 }
 0xb79   :  { %7377 = vmatpush3.msra.mxu1 %v8487_v42  ;;  %7384 = vmatprep.mubr.msk.f32.mxu1 %vm7841_vm5, %v9357_v30 }
 0xb7a   :  { %v3118_v17 = vand.u32 4294901760, %v3117_v10  ;;  %7378 = vmatprep.subr.mxu1 %v9357_v30 }
 0xb7b   :  { %7379 = vmatpush3.msra.mxu1 %v8504_v40 }
 0xb7c   :  { %v3119_v6 = vsub.f32 %v3117_v10, %v3118_v17  ;;  %7380 = vmatprep.subr.mxu1 %v9357_v30 }
 0xb7d   :  { %7381 = vmatpush3.msra.mxu1 %v8512_v14 }
 0xb7e   :  { %v3120_v9 = vand.u32 4294901760, %v3119_v6  ;;  %7382 = vmatprep.subr.mxu1 %v9357_v30 }
 0xb7f   :  { %7383 = vmatpush3.msra.mxu1 %v8522_v58 }
 0xb80   :  { %7385 = vmatmul.mubr.f32.vlgmr.msra.gmra.mxu1 %v3118_v17  ;;  %7398 = vmatprep.subr.mxu1 %v9357_v30 }
 0xb81   :  { %7352 = vmatmul.mubr.f32.vlgmr.msra.gmra.mxu0 %v3120_v9  ;;  %7399 = vmatpush3.msra.mxu1 %v8487_v42 }
 0xb82   :  { %7366 = vmatpush3.msra.mxu0 %v8502_v39  ;;  %7400 = vmatprep.subr.mxu1 %v9357_v30 }
 0xb83   :  { %7367 = vmatprep.subr.mxu0 %v9357_v30  ;;  %7401 = vmatpush3.msra.mxu1 %v8504_v40 }
 0xb84   :  { %7368 = vmatpush3.msra.mxu0 %v8520_v50  ;;  %7402 = vmatprep.subr.mxu1 %v9357_v30 }
 0xb85   :  { %7369 = vmatprep.subr.mxu0 %v9357_v30  ;;  %7403 = vmatpush3.msra.mxu1 %v8512_v14 }
 0xb86   :  { %7370 = vmatpush3.msra.mxu0 %v8528_v21  ;;  %7404 = vmatprep.subr.mxu1 %v9357_v30 }
 0xb87   :  { %7371 = vmatprep.subr.mxu0 %v9357_v30  ;;  %7373 = vmatprep.mubr.msk.f32.mxu0 %vm7841_vm5, %v9357_v30 }
 0xb88   :  { %7372 = vmatpush3.msra.mxu0 %v8540_v25  ;;  %7405 = vmatpush3.msra.mxu1 %v8522_v58 }
 0xb89   :  { %7406 = vmatprep.mubr.msk.f32.mxu1 %vm7841_vm5, %v9357_v30  ;;  %7374 = vmatmul.mubr.f32.vlgmr.msra.gmra.mxu0 %v3117_v10 }
 0xb8a   :  { %7387 = vmatprep.subr.mxu0 %v9357_v30  ;;  %7407 = vmatmul.mubr.f32.vlgmr.msra.gmra.mxu1 %v3116_v1 }
 0xb8b   :  { %7388 = vmatpush3.msra.mxu0 %v8517_v24  ;;  %7395 = vmatprep.mubr.msk.f32.mxu0 %vm7841_vm5, %v9357_v30 }
 0xb8c   :  { %7389 = vmatprep.subr.mxu0 %v9357_v30  ;;  %7420 = vmatprep.subr.mxu1 %v9357_v30 }
 0xb8d   :  { %7390 = vmatpush3.msra.mxu0 %v8537_v59  ;;  %7421 = vmatpush3.msra.mxu1 %v8552_v0 }
 0xb8e   :  { %7391 = vmatprep.subr.mxu0 %v9357_v30  ;;  %7422 = vmatprep.subr.mxu1 %v9357_v30 }
 0xb8f   :  { %7392 = vmatpush3.msra.mxu0 %v8546_v37  ;;  %7423 = vmatpush3.msra.mxu1 %v8569_v28 }
 0xb90   :  { %7393 = vmatprep.subr.mxu0 %v9357_v30  ;;  %7424 = vmatprep.subr.mxu1 %v9357_v30 }
 0xb91   :  { %7394 = vmatpush3.msra.mxu0 %v8557_v2  ;;  %7425 = vmatpush3.msra.mxu1 %v8577_v36 }
 0xb92   :  { %7396 = vmatmul.mubr.f32.vlgmr.msra.gmra.mxu0 %v3116_v1  ;;  %7426 = vmatprep.subr.mxu1 %v9357_v30 }
 0xb93   :  { %7427 = vmatpush3.msra.mxu1 %v8583_v49  ;;  %7409 = vmatprep.subr.mxu0 %v9357_v30 }
 0xb94   :  { %7428 = vmatprep.mubr.msk.f32.mxu1 %vm7841_vm5, %v9357_v30  ;;  %7442 = vmatprep.subr.mxu1 %v9357_v30 }
 0xb95   :  { %7410 = vmatpush3.msra.mxu0 %v8487_v42  ;;  %7417 = vmatprep.mubr.msk.f32.mxu0 %vm7841_vm5, %v9357_v30 }
 0xb96   :  { %7411 = vmatprep.subr.mxu0 %v9357_v30 }
 0xb97   :  { %7412 = vmatpush3.msra.mxu0 %v8504_v40 }
 0xb98   :  { %7413 = vmatprep.subr.mxu0 %v9357_v30 }
 0xb99   :  { %7414 = vmatpush3.msra.mxu0 %v8512_v14 }
 0xb9a   :  { %7415 = vmatprep.subr.mxu0 %v9357_v30 }
 0xb9b   :  { %7416 = vmatpush3.msra.mxu0 %v8522_v58 }
 0xb9c   :  { %7431 = vmatprep.subr.mxu0 %v9357_v30 }
 0xc38   :  { %v3213_v45 = vpop.f32.mrf.mxu1 }
 0xc3a   :  { %v7364_v60 = vpop.f32.mrf.mxu1 }
 0xc40   :  { %v3370_v18 = vpop.f32.mrf.mxu1 }
 0xc41   :  { %v3122_v7 = vpop.f32.mrf.mxu0 }
 0xc42   :  { %v7386_v8 = vpop.f32.mrf.mxu1  ;;  %v3214_v22 = vadd.f32 %v3213_v45, %v3122_v7 }
 0xc43   :  { %v7353_v12 = vpop.f32.mrf.mxu0 }
 0xc49   :  { %v3293_v13 = vpop.f32.mrf.mxu0 }
 0xc4a   :  { %v3528_v19 = vpop.f32.mrf.mxu1  ;;  %v3294_v31 = vadd.f32 %v3293_v13, %v3214_v22 }
 0xc4b   :  { %v7375_v26 = vpop.f32.mrf.mxu0 }
 0xc4c   :  { %v7408_v27 = vpop.f32.mrf.mxu1  ;;  %v3371_v34 = vadd.f32 %v3370_v18, %v3294_v31 }
 0xc52   :  { %v3453_v48 = vpop.f32.mrf.mxu0 }
 0xc53   :  { %v3454_v51 = vadd.f32 %v3453_v48, %v3371_v34 }
 0xc54   :  { %v7397_v52 = vpop.f32.mrf.mxu0 }
 0xc55   :  { %v3529_v55 = vadd.f32 %v3528_v19, %v3454_v51 }
 0xc57   :  { %v3542_v56 = vadd.f32 %v3529_v55, %v8677_v44  ;;  %v3533_v61 = vrot.slane %v3529_v55, 4 }
 0xc59   :  { %v3544_v57 = vrot.slane %v3542_v56, 4  ;;  %v3535_v62 = vadd.f32 %v3533_v61, %v8669_v47 }
 0xc5b   :  { %3545 = vrot.lane.b32.xlu0 %v3544_v57, %s7840_s13  ;;  %v6371_v63 = vmul.f32 -1.442695, %v3535_v62 }
 0xc5d   :  { %7785 = vpow2.f32 %v6371_v63 }
 0xc6a   :  { %v7786_v3 = vpop.eup %7785 }
 0xc6b   :  { %v3539_v4 = vadd.f32 1.0, %v7786_v3 }
 0xc6d   :  { %7787 = vrcp.f32 %v3539_v4 }
 0xc7a   :  { %v7788_v5 = vpop.eup %7787 }
 0xccd   :  { %v3546_v11 = vpop.permute.xlu0 %3545 }
 0xcce   :  { %v3548_v15 = vmul.f32 %v7788_v5, %v3546_v11 }
 0xcd0   :  { %3550 = vrot.lane.b32.xlu1 %v3548_v15, %s7840_s13 }
 0xd42   :  { %v3551_v16 = vpop.permute.xlu1 %3550 }
 0xd43   :  { %v3553_v33 = vadd.f32 %v3551_v16, %v8669_v47 }
 0xd45   :  { %7789 = vtanh.f32 %v3553_v33 }
 0xd52   :  { %v7790_v35 = vpop.eup %7789 }
 0xd53   :  { %v3556_v41 = vrot.slane %v7790_v35, 4 }
 0xd55   :  { %v3558_v46 = vsub.f32 %v8832_v20, %v3556_v41 }
 0xd57   :  { %v3560_v32 = vrot.slane %v3558_v46, 4 }
 0xd59   :  { %3561 = vrot.lane.b32.xlu0 %v3560_v32, %s7842_s4 }
 0xdcb   :  { %v3562_v43 = vpop.permute.xlu0 %3561 }
 0xdcc   :  { %v3564_v29 = vmul.f32 %v7788_v5, %v3562_v43 }
 0xdce   :  { %3566 = vrot.lane.b32.xlu1 %v3564_v29, %s7843_s22 }
 0xe40   :  { %v3567_v1 = vpop.permute.xlu1 %3566 }
 0xe41   :  { %v8905_v10 = vadd.f32 %v7790_v35, %v3567_v1 }
 0xe43   :  { %v3571_v17 = vrot.slane %v8905_v10, 4 }
 0xe45   :  { %3572 = vrot.lane.b32.xlu0 %v3571_v17, %s7840_s13 }
 0xeb7   :  { %v3573_v47 = vpop.permute.xlu0 %3572 }
 0xeb8   :  { %v3574_v6 = vsel %vm831_vm4, %v3573_v47, 0 }
 0xeb9   :  { %v3645_v9 = vand.u32 4294901760, %v3574_v6 }
 0xebb   :  { %v3646_v45 = vsub.f32 %v3574_v6, %v3645_v9  ;;  %7429 = vmatmul.mubr.f32.vlgmr.msra.gmra.mxu1 %v3645_v9 }
 0xebc   :  { %7443 = vmatpush3.msra.mxu1 %v8487_v42  ;;  %7450 = vmatprep.mubr.msk.f32.mxu1 %vm7841_vm5, %v9357_v30 }
 0xebd   :  { %v3647_v60 = vand.u32 4294901760, %v3646_v45  ;;  %7444 = vmatprep.subr.mxu1 %v9357_v30 }
 0xebe   :  { %7445 = vmatpush3.msra.mxu1 %v8504_v40 }
 0xebf   :  { %v3648_v18 = vsub.f32 %v3646_v45, %v3647_v60  ;;  %7446 = vmatprep.subr.mxu1 %v9357_v30 }
 0xec0   :  { %7447 = vmatpush3.msra.mxu1 %v8512_v14 }
 0xec1   :  { %v3649_v7 = vand.u32 4294901760, %v3648_v18  ;;  %7448 = vmatprep.subr.mxu1 %v9357_v30 }
 0xec2   :  { %7449 = vmatpush3.msra.mxu1 %v8522_v58 }
 0xec3   :  { %7451 = vmatmul.mubr.f32.vlgmr.msra.gmra.mxu1 %v3647_v60  ;;  %7464 = vmatprep.subr.mxu1 %v9357_v30 }
 0xec4   :  { %7418 = vmatmul.mubr.f32.vlgmr.msra.gmra.mxu0 %v3649_v7  ;;  %7465 = vmatpush3.msra.mxu1 %v8487_v42 }
 0xec5   :  { %7432 = vmatpush3.msra.mxu0 %v8502_v39  ;;  %7466 = vmatprep.subr.mxu1 %v9357_v30 }
 0xec6   :  { %7433 = vmatprep.subr.mxu0 %v9357_v30  ;;  %7467 = vmatpush3.msra.mxu1 %v8504_v40 }
 0xec7   :  { %7434 = vmatpush3.msra.mxu0 %v8520_v50  ;;  %7468 = vmatprep.subr.mxu1 %v9357_v30 }
 0xec8   :  { %7435 = vmatprep.subr.mxu0 %v9357_v30  ;;  %7469 = vmatpush3.msra.mxu1 %v8512_v14 }
 0xec9   :  { %7436 = vmatpush3.msra.mxu0 %v8528_v21  ;;  %7470 = vmatprep.subr.mxu1 %v9357_v30 }
 0xeca   :  { %7437 = vmatprep.subr.mxu0 %v9357_v30  ;;  %7439 = vmatprep.mubr.msk.f32.mxu0 %vm7841_vm5, %v9357_v30 }
 0xecb   :  { %7438 = vmatpush3.msra.mxu0 %v8540_v25  ;;  %7471 = vmatpush3.msra.mxu1 %v8522_v58 }
 0xecc   :  { %7472 = vmatprep.mubr.msk.f32.mxu1 %vm7841_vm5, %v9357_v30  ;;  %7440 = vmatmul.mubr.f32.vlgmr.msra.gmra.mxu0 %v3646_v45 }
 0xecd   :  { %7453 = vmatprep.subr.mxu0 %v9357_v30  ;;  %7473 = vmatmul.mubr.f32.vlgmr.msra.gmra.mxu1 %v3645_v9 }
 0xece   :  { %7454 = vmatpush3.msra.mxu0 %v8517_v24  ;;  %7461 = vmatprep.mubr.msk.f32.mxu0 %vm7841_vm5, %v9357_v30 }
 0xecf   :  { %7455 = vmatprep.subr.mxu0 %v9357_v30  ;;  %7486 = vmatprep.subr.mxu1 %v9357_v30 }
 0xed0   :  { %7456 = vmatpush3.msra.mxu0 %v8537_v59  ;;  %7487 = vmatpush3.msra.mxu1 %v8552_v0 }
 0xed1   :  { %7457 = vmatprep.subr.mxu0 %v9357_v30  ;;  %7488 = vmatprep.subr.mxu1 %v9357_v30 }
 0xed2   :  { %7458 = vmatpush3.msra.mxu0 %v8546_v37  ;;  %7489 = vmatpush3.msra.mxu1 %v8569_v28 }
 0xed3   :  { %7459 = vmatprep.subr.mxu0 %v9357_v30  ;;  %7490 = vmatprep.subr.mxu1 %v9357_v30 }
 0xed4   :  { %7460 = vmatpush3.msra.mxu0 %v8557_v2  ;;  %7491 = vmatpush3.msra.mxu1 %v8577_v36 }
 0xed5   :  { %7462 = vmatmul.mubr.f32.vlgmr.msra.gmra.mxu0 %v3645_v9  ;;  %7492 = vmatprep.subr.mxu1 %v9357_v30 }
 0xed6   :  { %7493 = vmatpush3.msra.mxu1 %v8583_v49  ;;  %7475 = vmatprep.subr.mxu0 %v9357_v30 }
 0xed7   :  { %7494 = vmatprep.mubr.msk.f32.mxu1 %vm7841_vm5, %v9357_v30  ;;  %7508 = vmatprep.subr.mxu1 %v9357_v30 }
 0xed8   :  { %7476 = vmatpush3.msra.mxu0 %v8487_v42  ;;  %7483 = vmatprep.mubr.msk.f32.mxu0 %vm7841_vm5, %v9357_v30 }
 0xed9   :  { %7477 = vmatprep.subr.mxu0 %v9357_v30 }
 0xeda   :  { %7478 = vmatpush3.msra.mxu0 %v8504_v40 }
 0xedb   :  { %7479 = vmatprep.subr.mxu0 %v9357_v30 }
 0xedc   :  { %7480 = vmatpush3.msra.mxu0 %v8512_v14 }
 0xedd   :  { %7481 = vmatprep.subr.mxu0 %v9357_v30 }
 0xede   :  { %7482 = vmatpush3.msra.mxu0 %v8522_v58 }
 0xedf   :  { %7497 = vmatprep.subr.mxu0 %v9357_v30 }
 0xf7b   :  { %v3742_v8 = vpop.f32.mrf.mxu1 }
 0xf7d   :  { %v7430_v12 = vpop.f32.mrf.mxu1 }
 0xf83   :  { %v3899_v13 = vpop.f32.mrf.mxu1 }
 0xf84   :  { %v3651_v19 = vpop.f32.mrf.mxu0 }
 0xf85   :  { %v7452_v22 = vpop.f32.mrf.mxu1  ;;  %v3743_v34 = vadd.f32 %v3742_v8, %v3651_v19 }
 0xf86   :  { %v7419_v26 = vpop.f32.mrf.mxu0 }
 0xf8c   :  { %v3822_v27 = vpop.f32.mrf.mxu0 }
 0xf8d   :  { %v4057_v31 = vpop.f32.mrf.mxu1  ;;  %v3823_v52 = vadd.f32 %v3822_v27, %v3743_v34 }
 0xf8e   :  { %v7441_v48 = vpop.f32.mrf.mxu0 }
 0xf8f   :  { %v7474_v51 = vpop.f32.mrf.mxu1  ;;  %v3900_v55 = vadd.f32 %v3899_v13, %v3823_v52 }
 0xf95   :  { %v3982_v56 = vpop.f32.mrf.mxu0 }
 0xf96   :  { %v3983_v57 = vadd.f32 %v3982_v56, %v3900_v55 }
 0xf97   :  { %v7463_v61 = vpop.f32.mrf.mxu0 }
 0xf98   :  { %v4058_v62 = vadd.f32 %v4057_v31, %v3983_v57 }
 0xf9a   :  { %v4068_v63 = vadd.f32 %v4058_v62, %v8677_v44  ;;  %v4061_v3 = vadd.f32 %v4058_v62, %v8675_v53 }
 0xf9c   :  { %4070 = vrot.lane.b32.xlu1 %v4068_v63, %s7840_s13  ;;  %v6372_v4 = vmul.f32 -1.442695, %v4061_v3 }
 0xf9e   :  { %7791 = vpow2.f32 %v6372_v4 }
 0xfab   :  { %v7792_v5 = vpop.eup %7791 }
 0xfac   :  { %v4065_v11 = vadd.f32 1.0, %v7792_v5 }
 0xfae   :  { %7793 = vrcp.f32 %v4065_v11 }
 0xfbb   :  { %v7794_v15 = vpop.eup %7793 }
0x100e   :  { %v4071_v16 = vpop.permute.xlu1 %4070 }
0x100f   :  { %v4073_v33 = vmul.f32 %v7794_v15, %v4071_v16 }
0x1011   :  { %4075 = vrot.lane.b32.xlu0 %v4073_v33, %s7840_s13 }
0x1083   :  { %v4076_v35 = vpop.permute.xlu0 %4075 }
0x1084   :  { %v4078_v41 = vadd.f32 %v4076_v35, %v8675_v53 }
0x1086   :  { %7795 = vtanh.f32 %v4078_v41 }
0x1093   :  { %v7796_v46 = vpop.eup %7795 }
0x1094   :  { %v4081_v32 = vrot.slane %v7796_v46, 4 }
0x1096   :  { %v4083_v43 = vsub.f32 %v8905_v10, %v4081_v32 }
0x1098   :  { %v4085_v29 = vrot.slane %v4083_v43, 4 }
0x109a   :  { %4086 = vrot.lane.b32.xlu1 %v4085_v29, %s7842_s4 }
0x110c   :  { %v4087_v1 = vpop.permute.xlu1 %4086 }
0x110d   :  { %v4089_v17 = vmul.f32 %v7794_v15, %v4087_v1 }
0x110f   :  { %4091 = vrot.lane.b32.xlu0 %v4089_v17, %s7843_s22 }
0x1181   :  { %v4092_v47 = vpop.permute.xlu0 %4091 }
0x1182   :  { %v8978_v6 = vadd.f32 %v7796_v46, %v4092_v47 }
0x1184   :  { %4096 = vrot.lane.b32.xlu1 %v8978_v6, %s7840_s13 }
0x11f6   :  { %v4097_v9 = vpop.permute.xlu1 %4096 }
0x11f7   :  { %v4098_v45 = vsel %vm831_vm4, %v4097_v9, 0 }
0x11f8   :  { %v4169_v60 = vand.u32 4294901760, %v4098_v45 }
0x11fa   :  { %v4170_v18 = vsub.f32 %v4098_v45, %v4169_v60  ;;  %7495 = vmatmul.mubr.f32.vlgmr.msra.gmra.mxu1 %v4169_v60 }
0x11fb   :  { %7509 = vmatpush3.msra.mxu1 %v8487_v42  ;;  %7516 = vmatprep.mubr.msk.f32.mxu1 %vm7841_vm5, %v9357_v30 }
0x11fc   :  { %v4171_v7 = vand.u32 4294901760, %v4170_v18  ;;  %7510 = vmatprep.subr.mxu1 %v9357_v30 }
0x11fd   :  { %7511 = vmatpush3.msra.mxu1 %v8504_v40 }
0x11fe   :  { %v4172_v8 = vsub.f32 %v4170_v18, %v4171_v7  ;;  %7512 = vmatprep.subr.mxu1 %v9357_v30 }
0x11ff   :  { %7513 = vmatpush3.msra.mxu1 %v8512_v14 }
0x1200   :  { %v4173_v12 = vand.u32 4294901760, %v4172_v8  ;;  %7514 = vmatprep.subr.mxu1 %v9357_v30 }
0x1201   :  { %7515 = vmatpush3.msra.mxu1 %v8522_v58 }
0x1202   :  { %7517 = vmatmul.mubr.f32.vlgmr.msra.gmra.mxu1 %v4171_v7  ;;  %7530 = vmatprep.subr.mxu1 %v9357_v30 }
0x1203   :  { %7484 = vmatmul.mubr.f32.vlgmr.msra.gmra.mxu0 %v4173_v12  ;;  %7531 = vmatpush3.msra.mxu1 %v8487_v42 }
0x1204   :  { %7498 = vmatpush3.msra.mxu0 %v8502_v39  ;;  %7532 = vmatprep.subr.mxu1 %v9357_v30 }
0x1205   :  { %7499 = vmatprep.subr.mxu0 %v9357_v30  ;;  %7533 = vmatpush3.msra.mxu1 %v8504_v40 }
0x1206   :  { %7500 = vmatpush3.msra.mxu0 %v8520_v50  ;;  %7534 = vmatprep.subr.mxu1 %v9357_v30 }
0x1207   :  { %7501 = vmatprep.subr.mxu0 %v9357_v30  ;;  %7535 = vmatpush3.msra.mxu1 %v8512_v14 }
0x1208   :  { %7502 = vmatpush3.msra.mxu0 %v8528_v21  ;;  %7536 = vmatprep.subr.mxu1 %v9357_v30 }
0x1209   :  { %7503 = vmatprep.subr.mxu0 %v9357_v30  ;;  %7505 = vmatprep.mubr.msk.f32.mxu0 %vm7841_vm5, %v9357_v30 }
0x120a   :  { %7504 = vmatpush3.msra.mxu0 %v8540_v25  ;;  %7537 = vmatpush3.msra.mxu1 %v8522_v58 }
0x120b   :  { %7538 = vmatprep.mubr.msk.f32.mxu1 %vm7841_vm5, %v9357_v30  ;;  %7506 = vmatmul.mubr.f32.vlgmr.msra.gmra.mxu0 %v4170_v18 }
0x120c   :  { %7519 = vmatprep.subr.mxu0 %v9357_v30  ;;  %7539 = vmatmul.mubr.f32.vlgmr.msra.gmra.mxu1 %v4169_v60 }
0x120d   :  { %7520 = vmatpush3.msra.mxu0 %v8517_v24  ;;  %7527 = vmatprep.mubr.msk.f32.mxu0 %vm7841_vm5, %v9357_v30 }
0x120e   :  { %7521 = vmatprep.subr.mxu0 %v9357_v30  ;;  %7552 = vmatprep.subr.mxu1 %v9357_v30 }
0x120f   :  { %7522 = vmatpush3.msra.mxu0 %v8537_v59  ;;  %7553 = vmatpush3.msra.mxu1 %v8552_v0 }
0x1210   :  { %7523 = vmatprep.subr.mxu0 %v9357_v30  ;;  %7554 = vmatprep.subr.mxu1 %v9357_v30 }
0x1211   :  { %7524 = vmatpush3.msra.mxu0 %v8546_v37  ;;  %7555 = vmatpush3.msra.mxu1 %v8569_v28 }
0x1212   :  { %7525 = vmatprep.subr.mxu0 %v9357_v30  ;;  %7556 = vmatprep.subr.mxu1 %v9357_v30 }
0x1213   :  { %7526 = vmatpush3.msra.mxu0 %v8557_v2  ;;  %7557 = vmatpush3.msra.mxu1 %v8577_v36 }
0x1214   :  { %7528 = vmatmul.mubr.f32.vlgmr.msra.gmra.mxu0 %v4169_v60  ;;  %7558 = vmatprep.subr.mxu1 %v9357_v30 }
0x1215   :  { %7559 = vmatpush3.msra.mxu1 %v8583_v49  ;;  %7541 = vmatprep.subr.mxu0 %v9357_v30 }
0x1216   :  { %7560 = vmatprep.mubr.msk.f32.mxu1 %vm7841_vm5, %v9357_v30  ;;  %7574 = vmatprep.subr.mxu1 %v9357_v30 }
0x1217   :  { %7542 = vmatpush3.msra.mxu0 %v8487_v42  ;;  %7549 = vmatprep.mubr.msk.f32.mxu0 %vm7841_vm5, %v9357_v30 }
0x1218   :  { %7543 = vmatprep.subr.mxu0 %v9357_v30 }
0x1219   :  { %7544 = vmatpush3.msra.mxu0 %v8504_v40 }
0x121a   :  { %7545 = vmatprep.subr.mxu0 %v9357_v30 }
0x121b   :  { %7546 = vmatpush3.msra.mxu0 %v8512_v14 }
0x121c   :  { %7547 = vmatprep.subr.mxu0 %v9357_v30 }
0x121d   :  { %7548 = vmatpush3.msra.mxu0 %v8522_v58 }
0x121e   :  { %7563 = vmatprep.subr.mxu0 %v9357_v30 }
0x12ba   :  { %v4266_v13 = vpop.f32.mrf.mxu1 }
0x12bc   :  { %v7496_v19 = vpop.f32.mrf.mxu1 }
0x12c2   :  { %v4423_v22 = vpop.f32.mrf.mxu1 }
0x12c3   :  { %v4175_v26 = vpop.f32.mrf.mxu0 }
0x12c4   :  { %v7518_v27 = vpop.f32.mrf.mxu1  ;;  %v4267_v51 = vadd.f32 %v4266_v13, %v4175_v26 }
0x12c5   :  { %v7485_v31 = vpop.f32.mrf.mxu0 }
0x12cb   :  { %v4346_v34 = vpop.f32.mrf.mxu0 }
0x12cc   :  { %v4581_v48 = vpop.f32.mrf.mxu1  ;;  %v4347_v56 = vadd.f32 %v4346_v34, %v4267_v51 }
0x12cd   :  { %v7507_v52 = vpop.f32.mrf.mxu0 }
0x12ce   :  { %v7540_v55 = vpop.f32.mrf.mxu1  ;;  %v4424_v57 = vadd.f32 %v4423_v22, %v4347_v56 }
0x12d4   :  { %v4506_v61 = vpop.f32.mrf.mxu0 }
0x12d5   :  { %v4507_v62 = vadd.f32 %v4506_v61, %v4424_v57 }
0x12d6   :  { %v7529_v63 = vpop.f32.mrf.mxu0 }
0x12d7   :  { %v4582_v3 = vadd.f32 %v4581_v48, %v4507_v62 }
0x12d9   :  { %v4595_v4 = vadd.f32 %v4582_v3, %v8677_v44  ;;  %v4586_v11 = vrot.slane %v4582_v3, 4 }
0x12db   :  { %v4597_v5 = vrot.slane %v4595_v4, 4  ;;  %v4588_v15 = vadd.f32 %v4586_v11, %v8675_v53 }
0x12dd   :  { %4598 = vrot.lane.b32.xlu0 %v4597_v5, %s7840_s13  ;;  %v6373_v16 = vmul.f32 -1.442695, %v4588_v15 }
0x12df   :  { %7797 = vpow2.f32 %v6373_v16 }
0x12ec   :  { %v7798_v33 = vpop.eup %7797 }
0x12ed   :  { %v4592_v35 = vadd.f32 1.0, %v7798_v33 }
0x12ef   :  { %7799 = vrcp.f32 %v4592_v35 }
0x12fc   :  { %v7800_v41 = vpop.eup %7799 }
0x134f   :  { %v4599_v46 = vpop.permute.xlu0 %4598 }
0x1350   :  { %v4601_v32 = vmul.f32 %v7800_v41, %v4599_v46 }
0x1352   :  { %4603 = vrot.lane.b32.xlu1 %v4601_v32, %s7840_s13 }
0x13c4   :  { %v4604_v43 = vpop.permute.xlu1 %4603 }
0x13c5   :  { %v4606_v29 = vadd.f32 %v4604_v43, %v8675_v53 }
0x13c7   :  { %7801 = vtanh.f32 %v4606_v29 }
0x13d4   :  { %v7802_v1 = vpop.eup %7801 }
0x13d5   :  { %v4609_v17 = vrot.slane %v7802_v1, 4 }
0x13d7   :  { %v4611_v47 = vsub.f32 %v8978_v6, %v4609_v17 }
0x13d9   :  { %v4613_v9 = vrot.slane %v4611_v47, 4 }
0x13db   :  { %4614 = vrot.lane.b32.xlu0 %v4613_v9, %s7842_s4 }
0x144d   :  { %v4615_v45 = vpop.permute.xlu0 %4614 }
0x144e   :  { %v4617_v60 = vmul.f32 %v7800_v41, %v4615_v45 }
0x1450   :  { %4619 = vrot.lane.b32.xlu1 %v4617_v60, %s7843_s22 }
0x14c2   :  { %v4620_v18 = vpop.permute.xlu1 %4619 }
0x14c3   :  { %v9051_v7 = vadd.f32 %v7802_v1, %v4620_v18 }
0x14c5   :  { %v4624_v8 = vrot.slane %v9051_v7, 4 }
0x14c7   :  { %4625 = vrot.lane.b32.xlu0 %v4624_v8, %s7840_s13 }
0x1539   :  { %v4626_v53 = vpop.permute.xlu0 %4625 }
0x153a   :  { %v4627_v12 = vsel %vm831_vm4, %v4626_v53, 0 }
0x153b   :  { %v4698_v13 = vand.u32 4294901760, %v4627_v12 }
0x153d   :  { %v4699_v19 = vsub.f32 %v4627_v12, %v4698_v13  ;;  %7561 = vmatmul.mubr.f32.vlgmr.msra.gmra.mxu1 %v4698_v13 }
0x153e   :  { %7575 = vmatpush3.msra.mxu1 %v8487_v42  ;;  %7582 = vmatprep.mubr.msk.f32.mxu1 %vm7841_vm5, %v9357_v30 }
0x153f   :  { %v4700_v22 = vand.u32 4294901760, %v4699_v19  ;;  %7576 = vmatprep.subr.mxu1 %v9357_v30 }
0x1540   :  { %7577 = vmatpush3.msra.mxu1 %v8504_v40 }
0x1541   :  { %v4701_v26 = vsub.f32 %v4699_v19, %v4700_v22  ;;  %7578 = vmatprep.subr.mxu1 %v9357_v30 }
0x1542   :  { %7579 = vmatpush3.msra.mxu1 %v8512_v14 }
0x1543   :  { %v4702_v27 = vand.u32 4294901760, %v4701_v26  ;;  %7580 = vmatprep.subr.mxu1 %v9357_v30 }
0x1544   :  { %7581 = vmatpush3.msra.mxu1 %v8522_v58 }
0x1545   :  { %7583 = vmatmul.mubr.f32.vlgmr.msra.gmra.mxu1 %v4700_v22  ;;  %7596 = vmatprep.subr.mxu1 %v9357_v30 }
0x1546   :  { %7550 = vmatmul.mubr.f32.vlgmr.msra.gmra.mxu0 %v4702_v27  ;;  %7597 = vmatpush3.msra.mxu1 %v8487_v42 }
0x1547   :  { %7564 = vmatpush3.msra.mxu0 %v8502_v39  ;;  %7598 = vmatprep.subr.mxu1 %v9357_v30 }
0x1548   :  { %7565 = vmatprep.subr.mxu0 %v9357_v30  ;;  %7599 = vmatpush3.msra.mxu1 %v8504_v40 }
0x1549   :  { %7566 = vmatpush3.msra.mxu0 %v8520_v50  ;;  %7600 = vmatprep.subr.mxu1 %v9357_v30 }
0x154a   :  { %7567 = vmatprep.subr.mxu0 %v9357_v30  ;;  %7601 = vmatpush3.msra.mxu1 %v8512_v14 }
0x154b   :  { %7568 = vmatpush3.msra.mxu0 %v8528_v21  ;;  %7602 = vmatprep.subr.mxu1 %v9357_v30 }
0x154c   :  { %7569 = vmatprep.subr.mxu0 %v9357_v30  ;;  %7571 = vmatprep.mubr.msk.f32.mxu0 %vm7841_vm5, %v9357_v30 }
0x154d   :  { %7570 = vmatpush3.msra.mxu0 %v8540_v25  ;;  %7603 = vmatpush3.msra.mxu1 %v8522_v58 }
0x154e   :  { %7604 = vmatprep.mubr.msk.f32.mxu1 %vm7841_vm5, %v9357_v30  ;;  %7572 = vmatmul.mubr.f32.vlgmr.msra.gmra.mxu0 %v4699_v19 }
0x154f   :  { %7585 = vmatprep.subr.mxu0 %v9357_v30  ;;  %7605 = vmatmul.mubr.f32.vlgmr.msra.gmra.mxu1 %v4698_v13 }
0x1550   :  { %7586 = vmatpush3.msra.mxu0 %v8517_v24  ;;  %7593 = vmatprep.mubr.msk.f32.mxu0 %vm7841_vm5, %v9357_v30 }
0x1551   :  { %7587 = vmatprep.subr.mxu0 %v9357_v30  ;;  %7618 = vmatprep.subr.mxu1 %v9357_v30 }
0x1552   :  { %7588 = vmatpush3.msra.mxu0 %v8537_v59  ;;  %7619 = vmatpush3.msra.mxu1 %v8552_v0 }
0x1553   :  { %7589 = vmatprep.subr.mxu0 %v9357_v30  ;;  %7620 = vmatprep.subr.mxu1 %v9357_v30 }
0x1554   :  { %7590 = vmatpush3.msra.mxu0 %v8546_v37  ;;  %7621 = vmatpush3.msra.mxu1 %v8569_v28 }
0x1555   :  { %7591 = vmatprep.subr.mxu0 %v9357_v30  ;;  %7622 = vmatprep.subr.mxu1 %v9357_v30 }
0x1556   :  { %7592 = vmatpush3.msra.mxu0 %v8557_v2  ;;  %7623 = vmatpush3.msra.mxu1 %v8577_v36 }
0x1557   :  { %7594 = vmatmul.mubr.f32.vlgmr.msra.gmra.mxu0 %v4698_v13  ;;  %7624 = vmatprep.subr.mxu1 %v9357_v30 }
0x1558   :  { %7625 = vmatpush3.msra.mxu1 %v8583_v49  ;;  %7607 = vmatprep.subr.mxu0 %v9357_v30 }
0x1559   :  { %7626 = vmatprep.mubr.msk.f32.mxu1 %vm7841_vm5, %v9357_v30  ;;  %7640 = vmatprep.subr.mxu1 %v9357_v30 }
0x155a   :  { %7608 = vmatpush3.msra.mxu0 %v8487_v42  ;;  %7615 = vmatprep.mubr.msk.f32.mxu0 %vm7841_vm5, %v9357_v30 }
0x155b   :  { %7609 = vmatprep.subr.mxu0 %v9357_v30 }
0x155c   :  { %7610 = vmatpush3.msra.mxu0 %v8504_v40 }
0x155d   :  { %7611 = vmatprep.subr.mxu0 %v9357_v30 }
0x155e   :  { %7612 = vmatpush3.msra.mxu0 %v8512_v14 }
0x155f   :  { %7613 = vmatprep.subr.mxu0 %v9357_v30 }
0x1560   :  { %7614 = vmatpush3.msra.mxu0 %v8522_v58 }
0x1561   :  { %7629 = vmatprep.subr.mxu0 %v9357_v30 }
0x15fd   :  { %v4795_v0 = vpop.f32.mrf.mxu1 }
0x15ff   :  { %v7562_v28 = vpop.f32.mrf.mxu1 }
0x1605   :  { %v4952_v36 = vpop.f32.mrf.mxu1 }
0x1606   :  { %v4704_v49 = vpop.f32.mrf.mxu0 }
0x1607   :  { %v7584_v31 = vpop.f32.mrf.mxu1  ;;  %v4796_v52 = vadd.f32 %v4795_v0, %v4704_v49 }
0x1608   :  { %v7551_v34 = vpop.f32.mrf.mxu0 }
0x160e   :  { %v4875_v48 = vpop.f32.mrf.mxu0 }
0x160f   :  { %v5110_v51 = vpop.f32.mrf.mxu1  ;;  %v4876_v57 = vadd.f32 %v4875_v48, %v4796_v52 }
0x1610   :  { %v7573_v55 = vpop.f32.mrf.mxu0 }
0x1611   :  { %v7606_v56 = vpop.f32.mrf.mxu1  ;;  %v4953_v61 = vadd.f32 %v4952_v36, %v4876_v57 }
0x1617   :  { %v5035_v62 = vpop.f32.mrf.mxu0 }
0x1618   :  { %v5036_v63 = vadd.f32 %v5035_v62, %v4953_v61 }
0x1619   :  { %v7595_v3 = vpop.f32.mrf.mxu0 }
0x161a   :  { %v5111_v4 = vadd.f32 %v5110_v51, %v5036_v63 }
0x161c   :  { %v5121_v5 = vadd.f32 %v5111_v4, %v8677_v44  ;;  %v5114_v11 = vadd.f32 %v5111_v4, %v8673_v23 }
0x161e   :  { %5123 = vrot.lane.b32.xlu1 %v5121_v5, %s7840_s13  ;;  %v6374_v15 = vmul.f32 -1.442695, %v5114_v11  ;;  %v5684_v11 = vld [vmem:[%s9338_s6 + $0x18] sm:$0xff] }
0x1620   :  { %7803 = vpow2.f32 %v6374_v15  ;;  %v5677_v15 = vsel %vm5676_vm6, %v8686_v38, %v8759_v54 }
0x162d   :  { %v7804_v16 = vpop.eup %7803 }
0x162e   :  { %v5118_v33 = vadd.f32 1.0, %v7804_v16 }
0x1630   :  { %7805 = vrcp.f32 %v5118_v33  ;;  %v5679_v33 = vsel %vm5676_vm6, %v8978_v6, %v9051_v7  ;;  %v5682_v6 = vld [vmem:[%s9338_s6 + $0x8] sm:$0xff] }
0x163d   :  { %v7806_v35 = vpop.eup %7805 }
0x1690   :  { %v5124_v41 = vpop.permute.xlu1 %5123 }
0x1691   :  { %v5126_v46 = vmul.f32 %v7806_v35, %v5124_v41  ;;  %v5683_v41 = vld [vmem:[%s9338_s6 + $0x10] sm:$0xff] }
0x1693   :  { %5128 = vrot.lane.b32.xlu0 %v5126_v46, %s7840_s13  ;;  %v9203_v46 = vand.u32 4294901760, %v5683_v41 }
0x1705   :  { %v5129_v32 = vpop.permute.xlu0 %5128 }
0x1706   :  { %v5131_v43 = vadd.f32 %v5129_v32, %v8673_v23  ;;  %v9211_v32 = vand.u32 4294901760, %v5682_v6 }
0x1708   :  { %7807 = vtanh.f32 %v5131_v43  ;;  %v5681_v43 = vld [vmem:[%s9338_s6] sm:$0xff]  ;;  %s7844_s6 = smov [#allocation2]  }
0x1709   :  { %s6344_s29 = sshll.u32 %s7844_s6, 4  ;;  %s6345_s29 = int_to_ptr.vmem [resolvable:$true] %s6344_s29 }
0x170a   :  { %s7815_s30 = scalar_lea.vmem %s6345_s29, 64  ;;  %p7820_p1 = scmp.lt.s32.totalorder %s6345_s29, %s6345_s29 }
0x170b   :  { %p7816_p0 = scmp.ne.s32.totalorder %s6345_s29, %s7815_s30  ;;  %p7821_p2 = scmp.lt.s32.totalorder %s7815_s30, %s7815_s30 }
0x170d   :  { %p7822_p3 = por %p7821_p2, %p7820_p1 }
0x170f   :  { %p7823_p4 = pnand %p7822_p3, %p7816_p0 }
0x1715   :  { %v7808_v29 = vpop.eup %7807 }
0x1716   :  { %v5134_v1 = vrot.slane %v7808_v29, 4 }
0x1718   :  { %v5136_v17 = vsub.f32 %v9051_v7, %v5134_v1  ;;  %v9209_v7 = vsub.f32 %v5683_v41, %v9203_v46  ;;  %v9222_v1 = vsub.f32 %v5682_v6, %v9211_v32 }
0x171a   :  { %v5138_v47 = vrot.slane %v5136_v17, 4  ;;  %v9224_v17 = vand.u32 4294901760, %v5681_v43 }
0x171c   :  { %5139 = vrot.lane.b32.xlu1 %v5138_v47, %s7842_s4 }
0x178e   :  { %v5140_v9 = vpop.permute.xlu1 %5139 }
0x178f   :  { %v5142_v45 = vmul.f32 %v7806_v35, %v5140_v9  ;;  %v9231_v9 = vand.u32 4294901760, %v9222_v1 }
0x1791   :  { %5144 = vrot.lane.b32.xlu0 %v5142_v45, %s7843_s22  ;;  %v9234_v45 = vsub.f32 %v5681_v43, %v9224_v17 }
0x1803   :  { %v5145_v60 = vpop.permute.xlu0 %5144 }
0x1804   :  { %v9124_v18 = vadd.f32 %v7808_v29, %v5145_v60  ;;  %v9219_v29 = vand.u32 4294901760, %v9209_v7 }
0x1806   :  { %5149 = vrot.lane.b32.xlu1 %v9124_v18, %s7840_s13  ;;  %v5856_v47 = vsub.f32 %v9209_v7, %v9219_v29 }
0x1808   :  { %v5857_v60 = vand.u32 4294901760, %v5856_v47 }
0x1878   :  { %v5150_v8 = vpop.permute.xlu1 %5149 }
0x1879   :  { %v5151_v53 = vsel %vm831_vm4, %v5150_v8, 0  ;;  %v5863_v8 = vsub.f32 %v9222_v1, %v9231_v9 }
0x187a   :  { %v5222_v12 = vand.u32 4294901760, %v5151_v53 }
0x187c   :  { %v5223_v13 = vsub.f32 %v5151_v53, %v5222_v12  ;;  %7627 = vmatmul.mubr.f32.vlgmr.msra.gmra.mxu1 %v5222_v12  ;;  %v9241_v53 = vand.u32 4294901760, %v9234_v45 }
0x187d   :  { %7641 = vmatpush3.msra.mxu1 %v8487_v42  ;;  %7648 = vmatprep.mubr.msk.f32.mxu1 %vm7841_vm5, %v9357_v30 }
0x187e   :  { %v5224_v19 = vand.u32 4294901760, %v5223_v13  ;;  %7642 = vmatprep.subr.mxu1 %v9357_v30 }
0x187f   :  { %7643 = vmatpush3.msra.mxu1 %v8504_v40 }
0x1880   :  { %v5225_v22 = vsub.f32 %v5223_v13, %v5224_v19  ;;  %7644 = vmatprep.subr.mxu1 %v9357_v30 }
0x1881   :  { %7645 = vmatpush3.msra.mxu1 %v8512_v14 }
0x1882   :  { %v5226_v26 = vand.u32 4294901760, %v5225_v22  ;;  %7646 = vmatprep.subr.mxu1 %v9357_v30 }
0x1883   :  { %7647 = vmatpush3.msra.mxu1 %v8522_v58 }
0x1884   :  { %7649 = vmatmul.mubr.f32.vlgmr.msra.gmra.mxu1 %v5224_v19  ;;  %7662 = vmatprep.subr.mxu1 %v9357_v30 }
0x1885   :  { %7616 = vmatmul.mubr.f32.vlgmr.msra.gmra.mxu0 %v5226_v26  ;;  %7663 = vmatpush3.msra.mxu1 %v8487_v42 }
0x1886   :  { %7630 = vmatpush3.msra.mxu0 %v8502_v39  ;;  %7664 = vmatprep.subr.mxu1 %v9357_v30 }
0x1887   :  { %7631 = vmatprep.subr.mxu0 %v9357_v30  ;;  %7665 = vmatpush3.msra.mxu1 %v8504_v40 }
0x1888   :  { %7632 = vmatpush3.msra.mxu0 %v8520_v50  ;;  %7666 = vmatprep.subr.mxu1 %v9357_v30 }
0x1889   :  { %7633 = vmatprep.subr.mxu0 %v9357_v30  ;;  %7667 = vmatpush3.msra.mxu1 %v8512_v14 }
0x188a   :  { %7634 = vmatpush3.msra.mxu0 %v8528_v21  ;;  %7668 = vmatprep.subr.mxu1 %v9357_v30 }
0x188b   :  { %7635 = vmatprep.subr.mxu0 %v9357_v30  ;;  %7637 = vmatprep.mubr.msk.f32.mxu0 %vm7841_vm5, %v9357_v30 }
0x188c   :  { %7636 = vmatpush3.msra.mxu0 %v8540_v25  ;;  %7669 = vmatpush3.msra.mxu1 %v8522_v58 }
0x188d   :  { %7670 = vmatprep.mubr.msk.f32.mxu1 %vm7841_vm5, %v9357_v30  ;;  %7638 = vmatmul.mubr.f32.vlgmr.msra.gmra.mxu0 %v5223_v13  ;;  %v5870_v13 = vsub.f32 %v9234_v45, %v9241_v53 }
0x188e   :  { %7651 = vmatprep.subr.mxu0 %v9357_v30  ;;  %7671 = vmatmul.mubr.f32.vlgmr.msra.gmra.mxu1 %v5222_v12 }
0x188f   :  { %7652 = vmatpush3.msra.mxu0 %v8517_v24  ;;  %7659 = vmatprep.mubr.msk.f32.mxu0 %vm7841_vm5, %v9357_v30  ;;  %v5871_v19 = vand.u32 4294901760, %v5870_v13 }
0x1890   :  { %7653 = vmatprep.subr.mxu0 %v9357_v30 }
0x1891   :  { %7654 = vmatpush3.msra.mxu0 %v8537_v59 }
0x1892   :  { %7655 = vmatprep.subr.mxu0 %v9357_v30 }
0x1893   :  { %7656 = vmatpush3.msra.mxu0 %v8546_v37 }
0x1894   :  { %7657 = vmatprep.subr.mxu0 %v9357_v30 }
0x1895   :  { %7658 = vmatpush3.msra.mxu0 %v8557_v2 }
0x1896   :  { %7660 = vmatmul.mubr.f32.vlgmr.msra.gmra.mxu0 %v5222_v12  ;;  %v5864_v12 = vand.u32 4294901760, %v5863_v8 }
0x193c   :  { %v5319_v42 = vpop.f32.mrf.mxu1 }
0x193e   :  { %v7628_v39 = vpop.f32.mrf.mxu1 }
0x1944   :  { %v5476_v40 = vpop.f32.mrf.mxu1 }
0x1945   :  { %v5228_v14 = vpop.f32.mrf.mxu0 }
0x1946   :  { %v7650_v24 = vpop.f32.mrf.mxu1  ;;  %v5320_v25 = vadd.f32 %v5319_v42, %v5228_v14  ;;  %v5678_v14 = vsel %vm5676_vm6, %v8832_v20, %v8905_v10 }
0x1947   :  { %v7617_v50 = vpop.f32.mrf.mxu0 }
0x194d   :  { %v5399_v58 = vpop.f32.mrf.mxu0 }
0x194e   :  { %v5634_v21 = vpop.f32.mrf.mxu1  ;;  %v5400_v0 = vadd.f32 %v5399_v58, %v5320_v25 }
0x194f   :  { %v7639_v27 = vpop.f32.mrf.mxu0 }
0x1950   :  { %v7672_v59 = vpop.f32.mrf.mxu1  ;;  %v5477_v28 = vadd.f32 %v5476_v40, %v5400_v0 }
0x1956   :  { %v5559_v36 = vpop.f32.mrf.mxu0 }
0x1957   :  { %v5560_v37 = vadd.f32 %v5559_v36, %v5477_v28 }
0x1958   :  { %v7661_v49 = vpop.f32.mrf.mxu0 }
0x1959   :  { %v5635_v30 = vadd.f32 %v5634_v21, %v5560_v37 }
0x195b   :  { %v5648_v2 = vadd.f32 %v5635_v30, %v8677_v44  ;;  %v5639_v34 = vrot.slane %v5635_v30, 4 }
0x195d   :  { %v5650_v31 = vrot.slane %v5648_v2, 4  ;;  %v5641_v48 = vadd.f32 %v5639_v34, %v8673_v23 }
0x195f   :  { %5651 = vrot.lane.b32.xlu0 %v5650_v31, %s7840_s13  ;;  %v6375_v51 = vmul.f32 -1.442695, %v5641_v48 }
0x1961   :  { %7809 = vpow2.f32 %v6375_v51 }
0x196e   :  { %v7810_v52 = vpop.eup %7809 }
0x196f   :  { %v5645_v55 = vadd.f32 1.0, %v7810_v52 }
0x1971   :  { %7811 = vrcp.f32 %v5645_v55 }
0x197e   :  { %v7812_v56 = vpop.eup %7811 }
0x19d1   :  { %v5652_v57 = vpop.permute.xlu0 %5651 }
0x19d2   :  { %v5654_v61 = vmul.f32 %v7812_v56, %v5652_v57 }
0x19d4   :  { %5656 = vrot.lane.b32.xlu1 %v5654_v61, %s7840_s13 }
0x1a46   :  { %v5657_v62 = vpop.permute.xlu1 %5656 }
0x1a47   :  { %v5659_v63 = vadd.f32 %v5657_v62, %v8673_v23  ;;  %v9183_v23 = vand.u32 4294901760, %v5684_v11 }
0x1a49   :  { %7813 = vtanh.f32 %v5659_v63  ;;  %v9187_v16 = vsub.f32 %v5684_v11, %v9183_v23  ;;  %7673 = vmatprep.subr.mxu0 %v9183_v23 }
0x1a4a   :  { %7674 = vmatpush3.msra.mxu0 %v9183_v23 }
0x1a4b   :  { %v9195_v35 = vand.u32 4294901760, %v9187_v16  ;;  %7675 = vmatprep.subr.mxu0 %v9203_v46 }
0x1a4c   :  { %7676 = vmatpush3.msra.mxu0 %v9203_v46 }
0x1a4d   :  { %v5849_v38 = vsub.f32 %v9187_v16, %v9195_v35  ;;  %7677 = vmatprep.subr.mxu0 %v9211_v32 }
0x1a4e   :  { %7678 = vmatpush3.msra.mxu0 %v9211_v32 }
0x1a4f   :  { %v5850_v54 = vand.u32 4294901760, %v5849_v38  ;;  %7679 = vmatprep.subr.mxu0 %v9224_v17 }
0x1a50   :  { %7680 = vmatpush3.msra.mxu0 %v9224_v17 }
0x1a51   :  { %7687 = vmatprep.subr.mxu1 %v5850_v54  ;;  %7701 = vmatprep.subr.mxu0 %v9187_v16 }
0x1a52   :  { %7688 = vmatpush3.msra.mxu1 %v5850_v54 }
0x1a53   :  { %7689 = vmatprep.subr.mxu1 %v5857_v60 }
0x1a54   :  { %7690 = vmatpush3.msra.mxu1 %v5857_v60 }
0x1a55   :  { %7691 = vmatprep.subr.mxu1 %v5864_v12 }
0x1a56   :  { %v9172_v44 = vpop.eup %7813  ;;  %7692 = vmatpush3.msra.mxu1 %v5864_v12 }
0x1a57   :  { %v5662_v3 = vrot.slane %v9172_v44, 4  ;;  %7693 = vmatprep.subr.mxu1 %v5871_v19 }
0x1a58   :  { %7694 = vmatpush3.msra.mxu1 %v5871_v19 }
0x1a59   :  { %v5664_v4 = vsub.f32 %v9124_v18, %v5662_v3  ;;  %7715 = vmatprep.subr.mxu1 %v9183_v23 }
0x1a5b   :  { %v5666_v5 = vrot.slane %v5664_v4, 4 }
0x1a5d   :  { %5667 = vrot.lane.b32.xlu0 %v5666_v5, %s7842_s4 }
0x1a61   :  { %5696 = vrot.lane.b32.xlu0 %v5677_v15, %s7840_s13 }
0x1a65   :  { %5700 = vrot.lane.b32.xlu0 %v5679_v33, %s7840_s13 }
0x1acf   :  { %v5668_v22 = vpop.permute.xlu0 %5667 }
0x1ad0   :  { %v5670_v26 = vmul.f32 %v7812_v56, %v5668_v22 }
0x1ad2   :  { %5672 = vrot.lane.b32.xlu1 %v5670_v26, %s7843_s22 }
0x1ad3   :  { %v5697_v42 = vpop.permute.xlu0 %5696 }
0x1ad4   :  { %v5704_v39 = vsel %vm831_vm4, %v5697_v42, 0 }
0x1ad5   :  { %v9249_v40 = vand.u32 4294901760, %v5704_v39 }
0x1ad6   :  { %5698 = vrot.lane.b32.xlu1 %v5678_v14, %s7840_s13 }
0x1ad7   :  { %v9256_v24 = vsub.f32 %v5704_v39, %v9249_v40  ;;  %7695 = vmatprep.mubr.f32.mxu1 %v9249_v40  ;;  %v5701_v25 = vpop.permute.xlu0 %5700 }
0x1ad8   :  { %v5708_v27 = vsel %vm831_vm4, %v5701_v25, 0 }
0x1ad9   :  { %v5783_v50 = vand.u32 4294901760, %v9256_v24  ;;  %v9262_v59 = vand.u32 4294901760, %v5708_v27 }
0x1adb   :  { %v5784_v58 = vsub.f32 %v9256_v24, %v5783_v50  ;;  %v5802_v10 = vsub.f32 %v5708_v27, %v9262_v59 }
0x1add   :  { %v5785_v21 = vand.u32 4294901760, %v5784_v58  ;;  %v5803_v30 = vand.u32 4294901760, %v5802_v10 }
0x1adf   :  { %7681 = vmatprep.mubr.f32.mxu0 %v5785_v21 }
0x1b44   :  { %v5673_v0 = vpop.permute.xlu1 %5672 }
0x1b45   :  { %v5675_v20 = vadd.f32 %v9172_v44, %v5673_v0 }
0x1b47   :  { %6331 = vrot.lane.b32.xlu0 %v5675_v20, %s7840_s13  ;;  %v5680_v28 = vsel %vm5676_vm6, %v9124_v18, %v5675_v20  ;;  %v5804_v18 = vsub.f32 %v5802_v10, %v5803_v30 }
0x1b48   :  { %5702 = vrot.lane.b32.xlu1 %v5680_v28, %s7840_s13  ;;  %v5699_v36 = vpop.permute.xlu1 %5698 }
0x1b49   :  { %v5706_v37 = vsel %vm831_vm4, %v5699_v36, 0  ;;  %v5805_v51 = vand.u32 4294901760, %v5804_v18 }
0x1b4a   :  { %v9271_v49 = vand.u32 4294901760, %v5706_v37 }
0x1b4c   :  { %v5792_v2 = vsub.f32 %v5706_v37, %v9271_v49  ;;  %7696 = vmatmul.mubr.f32.vlgmr.msra.gmra.mxu1 %v9271_v49 }
0x1b4d   :  { %7698 = vmatprep.mubr.f32.mxu1 %v9262_v59  ;;  %7716 = vmatpush3.msra.mxu1 %v9183_v23 }
0x1b4e   :  { %v5793_v31 = vand.u32 4294901760, %v5792_v2  ;;  %7717 = vmatprep.subr.mxu1 %v9203_v46 }
0x1b4f   :  { %7718 = vmatpush3.msra.mxu1 %v9203_v46 }
0x1b50   :  { %v5794_v34 = vsub.f32 %v5792_v2, %v5793_v31  ;;  %7719 = vmatprep.subr.mxu1 %v9211_v32 }
0x1b51   :  { %7720 = vmatpush3.msra.mxu1 %v9211_v32 }
0x1b52   :  { %v5795_v48 = vand.u32 4294901760, %v5794_v34  ;;  %7721 = vmatprep.subr.mxu1 %v9224_v17 }
0x1b53   :  { %7722 = vmatpush3.msra.mxu1 %v9224_v17 }
0x1b54   :  { %7682 = vmatmul.mubr.f32.vlgmr.msra.gmra.mxu0 %v5795_v48  ;;  %7743 = vmatprep.subr.mxu1 %v9183_v23 }
0x1b55   :  { %7684 = vmatprep.mubr.f32.mxu0 %v5805_v51  ;;  %7702 = vmatpush3.msra.mxu0 %v9187_v16 }
0x1b56   :  { %7703 = vmatprep.subr.mxu0 %v9209_v7 }
0x1b57   :  { %7704 = vmatpush3.msra.mxu0 %v9209_v7 }
0x1b58   :  { %7705 = vmatprep.subr.mxu0 %v9222_v1 }
0x1b59   :  { %7706 = vmatpush3.msra.mxu0 %v9222_v1 }
0x1b5a   :  { %7707 = vmatprep.subr.mxu0 %v9234_v45 }
0x1b5b   :  { %7708 = vmatpush3.msra.mxu0 %v9234_v45 }
0x1b5c   :  { %7729 = vmatprep.subr.mxu0 %v9195_v35 }
0x1bb9   :  { %v6332_v52 = vpop.permute.xlu0 %6331 }
0x1bba   :  { %6335 = vst.msk [vmem:[#allocation2 - $0x4] sm:$0xf0] %vm6334_vm7, %v6332_v52  ;;  %v5703_v55 = vpop.permute.xlu1 %5702 }
0x1bbb   :  { %v5710_v56 = vsel %vm831_vm4, %v5703_v55, 0 }
0x1bbc   :  { %v5811_v57 = vand.u32 4294901760, %v5710_v56 }
0x1bbe   :  { %v5812_v61 = vsub.f32 %v5710_v56, %v5811_v57  ;;  %7699 = vmatmul.mubr.f32.gmra.mxu1 %v5811_v57 }
0x1bbf   :  { %7723 = vmatprep.mubr.f32.mxu1 %v5783_v50 }
0x1bc0   :  { %v5813_v62 = vand.u32 4294901760, %v5812_v61 }
0x1bc2   :  { %7724 = vmatmul.mubr.f32.vlgmr.msra.gmra.mxu1 %v5793_v31  ;;  %v5814_v63 = vsub.f32 %v5812_v61, %v5813_v62 }
0x1bc3   :  { %7726 = vmatprep.mubr.f32.mxu1 %v5803_v30  ;;  %7744 = vmatpush3.msra.mxu1 %v9183_v23 }
0x1bc4   :  { %7745 = vmatprep.subr.mxu1 %v9203_v46  ;;  %v5815_v44 = vand.u32 4294901760, %v5814_v63 }
0x1bc5   :  { %7746 = vmatpush3.msra.mxu1 %v9203_v46 }
0x1bc6   :  { %7685 = vmatmul.mubr.f32.gmra.mxu0 %v5815_v44  ;;  %7727 = vmatmul.mubr.f32.gmra.mxu1 %v5813_v62 }
0x1bc7   :  { %7747 = vmatprep.subr.mxu1 %v9211_v32  ;;  %7709 = vmatprep.mubr.f32.mxu0 %v9256_v24 }
0x1bc8   :  { %7748 = vmatpush3.msra.mxu1 %v9211_v32  ;;  %7751 = vmatprep.mubr.f32.mxu1 %v9249_v40 }
0x1bc9   :  { %7749 = vmatprep.subr.mxu1 %v9224_v17 }
0x1bca   :  { %7750 = vmatpush3.msra.mxu1 %v9224_v17  ;;  %7710 = vmatmul.mubr.f32.vlgmr.msra.gmra.mxu0 %v5792_v2 }
0x1bcb   :  { %7730 = vmatpush3.msra.mxu0 %v9195_v35  ;;  %7752 = vmatmul.mubr.f32.vlgmr.msra.gmra.mxu1 %v9271_v49 }
0x1bcc   :  { %7712 = vmatprep.mubr.f32.mxu0 %v5802_v10  ;;  %7731 = vmatprep.subr.mxu0 %v9219_v29 }
0x1bcd   :  { %7754 = vmatprep.mubr.f32.mxu1 %v9262_v59  ;;  %7732 = vmatpush3.msra.mxu0 %v9219_v29 }
0x1bce   :  { %7733 = vmatprep.subr.mxu0 %v9231_v9  ;;  %7713 = vmatmul.mubr.f32.gmra.mxu0 %v5812_v61 }
0x1bcf   :  { %7734 = vmatpush3.msra.mxu0 %v9231_v9  ;;  %7755 = vmatmul.mubr.f32.gmra.mxu1 %v5811_v57 }
0x1bd0   :  { %7735 = vmatprep.subr.mxu0 %v9241_v53  ;;  %7737 = vmatprep.mubr.f32.mxu0 %v9249_v40 }
0x1bd1   :  { %7736 = vmatpush3.msra.mxu0 %v9241_v53 }
0x1bd2   :  { %7738 = vmatmul.mubr.f32.vlgmr.msra.gmra.mxu0 %v9271_v49 }
0x1bd3   :  { %7740 = vmatprep.mubr.f32.mxu0 %v9262_v59 }
0x1bd6   :  { %7741 = vmatmul.mubr.f32.gmra.mxu0 %v5811_v57 }
0x1bd7   :  { %7826 = shalt.err (!%p7823_p4)
}
0x1bd8   :  { %6347 = dma.vmem_to_hbm [thread:$0]  %s6345_s29, 64, %s9341_s9, [#allocation3]   ;;  %v6376_v16 = vld [vmem:[%s9339_s7] ss:$0 sm:$0xff] }
0x1c0c   :  { %v7697_v3 = vpop.f32.mrf.mxu1 }
0x1c0e   :  { %v5908_v4 = vpop.f32.mrf.mxu1 }
0x1c14   :  { %v7683_v11 = vpop.f32.mrf.mxu0 }
0x1c15   :  { %v5798_v41 = vadd.f32 %v7683_v11, %v6376_v16 }
0x1c16   :  { %v5787_v33 = vpop.f32.mrf.mxu0 }
0x1c17   :  { %v5788_v6 = vadd.f32 %v6376_v16, %v5787_v33  ;;  %v5915_v29 = vadd.f32 %v7697_v3, %v5798_v41 }
0x1c19   :  { %v5909_v9 = vadd.f32 %v5908_v4, %v5788_v6 }
0x1c7e   :  { %v7700_v5 = vpop.f32.mrf.mxu1 }
0x1c80   :  { %v5920_v15 = vpop.f32.mrf.mxu1 }
0x1c82   :  { %v7725_v23 = vpop.f32.mrf.mxu1 }
0x1c84   :  { %v6104_v35 = vpop.f32.mrf.mxu1 }
0x1c86   :  { %v7686_v38 = vpop.f32.mrf.mxu0  ;;  %v7728_v54 = vpop.f32.mrf.mxu1 }
0x1c87   :  { %v5818_v43 = vadd.f32 %v7686_v38, %v6376_v16 }
0x1c88   :  { %v5807_v46 = vpop.f32.mrf.mxu0  ;;  %v6120_v7 = vpop.f32.mrf.mxu1 }
0x1c89   :  { %v5808_v17 = vadd.f32 %v6376_v16, %v5807_v46  ;;  %v5927_v53 = vadd.f32 %v7700_v5, %v5818_v43 }
0x1c8a   :  { %v7711_v32 = vpop.f32.mrf.mxu0 }
0x1c8b   :  { %v6014_v47 = vadd.f32 %v7711_v32, %v5915_v29  ;;  %v7753_v45 = vpop.f32.mrf.mxu1  ;;  %v5921_v19 = vadd.f32 %v5920_v15, %v5808_v17 }
0x1c8c   :  { %v6006_v1 = vpop.f32.mrf.mxu0 }
0x1c8d   :  { %v6007_v8 = vadd.f32 %v6006_v1, %v5909_v9  ;;  %v6113_v22 = vadd.f32 %v7725_v23, %v6014_v47  ;;  %v6304_v26 = vpop.f32.mrf.mxu1 }
0x1c8e   :  { %v7714_v60 = vpop.f32.mrf.mxu0 }
0x1c8f   :  { %v6028_v13 = vadd.f32 %v7714_v60, %v5927_v53  ;;  %v6105_v14 = vadd.f32 %v6104_v35, %v6007_v8  ;;  %v7756_v25 = vpop.f32.mrf.mxu1 }
0x1c90   :  { %v6020_v12 = vpop.f32.mrf.mxu0 }
0x1c91   :  { %v6021_v39 = vadd.f32 %v6020_v12, %v5921_v19  ;;  %v6129_v21 = vadd.f32 %v7728_v54, %v6028_v13  ;;  %v6316_v37 = vpop.f32.mrf.mxu1 }
0x1c92   :  { %v7739_v42 = vpop.f32.mrf.mxu0 }
0x1c93   :  { %v6218_v40 = vadd.f32 %v7739_v42, %v6113_v22  ;;  %v6121_v20 = vadd.f32 %v6120_v7, %v6021_v39 }
0x1c94   :  { %v6211_v24 = vpop.f32.mrf.mxu0 }
0x1c95   :  { %v6311_v50 = vadd.f32 %v7753_v45, %v6218_v40  ;;  %v6212_v58 = vadd.f32 %v6211_v24, %v6105_v14 }
0x1c96   :  { %v7742_v27 = vpop.f32.mrf.mxu0 }
0x1c97   :  { %6327 = vst [vmem:[%s9340_s8 + $0x8] sm:$0xff] %v6311_v50  ;;  %v6305_v59 = vadd.f32 %v6304_v26, %v6212_v58  ;;  %v6230_v0 = vadd.f32 %v7742_v27, %v6129_v21 }
0x1c98   :  { %v6223_v10 = vpop.f32.mrf.mxu0 }
0x1c99   :  { %6326 = vst [vmem:[%s9340_s8] sm:$0xff] %v6305_v59  ;;  %v6323_v28 = vadd.f32 %v7756_v25, %v6230_v0  ;;  %v6224_v36 = vadd.f32 %v6223_v10, %v6121_v20 }
0x1c9b   :  { %6329 = vst [vmem:[%s9340_s8 + $0x18] sm:$0xff] %v6323_v28  ;;  %v6317_v49 = vadd.f32 %v6316_v37, %v6224_v36 }
0x1c9d   :  { %6328 = vst [vmem:[%s9340_s8 + $0x10] sm:$0xff] %v6317_v49 }
0x1c9e   :  { %7835 = dma.done.wait [#allocation3], 64  }
0x1c9f   :  { %7836 = vsyncadd [#allocation3], 4294967232 }
0x1ca0   :  { %6353 = vsyncpa [#allocation3], 1 }

</bundles_post_ra>
